<compile_context>
chip_gen: v6e
topology: v6e:2x2x1
jax: 0.10.0
libtpu: 0.0.40
codegen_flags: <defaults>
</compile_context>

<pallas_src>
import jax
import jax.numpy as jnp
from jax.experimental import pallas as pl
from jax.experimental.pallas import tpu as pltpu

EPS = 1e-6
WIN_NUM = 3                 # red_kernel_size = 1, 3, 5
PAD = WIN_NUM - 1           # = 2, half-width of the largest window


def _mw_dice_kernel(x_ref, t_ref, out_ref, ppad_ref, spad_ref):
    """One grid step: a block of CB flattened (N*C) channels of the full image.

    x_ref, t_ref : (CB, H, W) input / target block (cast to f32 in-kernel)
    out_ref      : (1, 1, 128) f32 - partial sum of dice_1 + dice_3 + dice_5
                   over this block (scalar broadcast across the 128 lanes)
    ppad_ref     : (CB, H+2*PAD, W+2*PAD) f32 scratch - zero-padded x*t
    spad_ref     : (CB, H+2*PAD, W+2*PAD) f32 scratch - zero-padded x+t
    """
    CB, H, W = x_ref.shape

    x = x_ref[...].astype(jnp.float32)
    t = t_ref[...].astype(jnp.float32)

    # Build the zero-padded product / sum entirely in VMEM (no HBM pre-pad).
    # Re-zero every step: with a "parallel" grid axis the scratch may live on a
    # different core per step, so a step-0-only init would be unsafe.
    ppad_ref[...] = jnp.zeros_like(ppad_ref)
    spad_ref[...] = jnp.zeros_like(spad_ref)
    ppad_ref[:, PAD:PAD + H, PAD:PAD + W] = x * t
    spad_ref[:, PAD:PAD + H, PAD:PAD + W] = x + t

    def box_sums(apad):
        # Separable, incremental k x k box sums (k = 1, 3, 5) of the padded
        # array; returns the interior (CB, H, W) sums. 10 adds per array.
        r1 = apad[:, :, PAD:PAD + W]                                   # (CB, Hp, W)
        r3 = r1 + apad[:, :, PAD - 1:PAD - 1 + W] + apad[:, :, PAD + 1:PAD + 1 + W]
        r5 = r3 + apad[:, :, PAD - 2:PAD - 2 + W] + apad[:, :, PAD + 2:PAD + 2 + W]

        b1 = r1[:, PAD:PAD + H, :]
        b3 = (r3[:, PAD:PAD + H, :]
              + r3[:, PAD - 1:PAD - 1 + H, :] + r3[:, PAD + 1:PAD + 1 + H, :])
        b5 = (r5[:, PAD:PAD + H, :]
              + r5[:, PAD - 1:PAD - 1 + H, :] + r5[:, PAD + 1:PAD + 1 + H, :]
              + r5[:, PAD - 2:PAD - 2 + H, :] + r5[:, PAD + 2:PAD + 2 + H, :])
        return (b1, b3, b5)

    prod_boxes = box_sums(ppad_ref[...])   # box sums of x*t
    sum_boxes = box_sums(spad_ref[...])    # box sums of x+t

    # Accumulate dice of the three windows elementwise; reduce once per block.
    acc = jnp.zeros((CB, H, W), jnp.float32)
    for w in range(WIN_NUM):
        k = 2 * w + 1
        inv_k2 = 1.0 / float(k * k)
        inter = prod_boxes[w] * inv_k2          # avg_k(x * t)
        denom = sum_boxes[w] * inv_k2           # avg_k(x) + avg_k(t)
        acc = acc + (2.0 * inter + EPS) / (denom + EPS)

    partial = jnp.sum(acc)
    out_ref[...] = jnp.full(out_ref.shape, partial, jnp.float32)


def _choose_block_channels(nc, hp, wp, budget_bytes=2 * 1024 * 1024):
    """Pick a channel-block size CB that divides nc and keeps VMEM use small.

    Rough per-channel footprint: 2 inputs x 2 pipeline buffers + 2 padded
    scratches + a few f32 temporaries ~= 10 * Hp*Wp * 4 bytes.  Also prefer
    >= 2 grid steps when possible (pipelining; 2 TensorCores on v7x).
    """
    per_chan = 10 * hp * wp * 4
    max_cb = max(1, budget_bytes // per_chan)
    target = min(max_cb, max(1, nc // 2)) if nc >= 2 else 1
    cb = 1
    for d in range(1, nc + 1):
        if nc % d == 0 and d <= target:
            cb = d
    return cb


def multiwindow_dice_loss(inp, tgt):
    """inp, tgt: (N, C, H, W) float arrays. Returns scalar f32 multi-window loss."""
    assert inp.shape == tgt.shape and inp.ndim == 4
    N, C, H, W = inp.shape
    NC = N * C
    Hp, Wp = H + 2 * PAD, W + 2 * PAD

    x2 = inp.reshape(NC, H, W)
    t2 = tgt.reshape(NC, H, W)

    CB = _choose_block_channels(NC, Hp, Wp)
    G = NC // CB

    partials = pl.pallas_call(
        _mw_dice_kernel,
        out_shape=jax.ShapeDtypeStruct((G, 1, 128), jnp.float32),
        grid=(G,),
        in_specs=[
            pl.BlockSpec((CB, H, W), lambda i: (i, 0, 0)),
            pl.BlockSpec((CB, H, W), lambda i: (i, 0, 0)),
        ],
        out_specs=pl.BlockSpec((1, 1, 128), lambda i: (i, 0, 0)),
        scratch_shapes=[
            pltpu.VMEM((CB, Hp, Wp), jnp.float32),
            pltpu.VMEM((CB, Hp, Wp), jnp.float32),
        ],
        compiler_params=pltpu.CompilerParams(
            dimension_semantics=("parallel",),
            vmem_limit_bytes=32 * 1024 * 1024,
        ),
    )(x2, t2)

    total_dice = jnp.sum(partials[:, 0, 0])
    return (jnp.float32(WIN_NUM)
            - total_dice / jnp.float32(NC * H * W)).astype(jnp.float32)


def _reference_loss(inp, tgt):
    """Pure-JAX reference of the same semantics (correctness check)."""
    inp = inp.astype(jnp.float32)
    tgt = tgt.astype(jnp.float32)
    total = jnp.float32(0.0)
    for w in range(WIN_NUM):
        k = 2 * w + 1
        kern = jnp.full((1, 1, k, k), 1.0 / (k * k), jnp.float32)

        def conv(a):
            n, c, h, wd = a.shape
            a2 = a.reshape(n * c, 1, h, wd)
            o = jax.lax.conv_general_dilated(
                a2, kern, window_strides=(1, 1),
                padding=[(k // 2, k // 2), (k // 2, k // 2)],
                dimension_numbers=("NCHW", "OIHW", "NCHW"))
            return o.reshape(n, c, h, wd)

        inter = conv(inp * tgt)
        px = conv(inp)
        pt = conv(tgt)
        dice = (2.0 * inter + EPS) / (px + pt + EPS)
        total = total + (1.0 - jnp.mean(dice))
    return total


if __name__ == "__main__":
    key = jax.random.PRNGKey(0)
    k1, k2 = jax.random.split(key)

    N, C, H, W = 2, 4, 16, 16
    # "input" are soft predictions in [0,1], "target" is a binary mask.
    x = jax.nn.sigmoid(jax.random.normal(k1, (N, C, H, W), jnp.float32))
    t = (jax.random.uniform(k2, (N, C, H, W)) > 0.5).astype(jnp.float32)

    loss = multiwindow_dice_loss(x, t)
    jax.block_until_ready(loss)

    ref = _reference_loss(x, t)
    jax.block_until_ready(ref)

    assert jnp.allclose(loss, ref, atol=1e-4, rtol=1e-4), (loss, ref)
    print("KERNEL_OK")
</pallas_src>

<mosaic_0001>
module attributes {stable_mosaic.version = 11 : i64} {
  func.func @_mw_dice_kernel(%arg0: i32, %arg1: memref<4x16x16xf32, #tpu.memory_space<vmem>>, %arg2: memref<4x16x16xf32, #tpu.memory_space<vmem>>, %arg3: memref<1x1x128xf32, #tpu.memory_space<vmem>>, %arg4: memref<4x20x20xf32, #tpu.memory_space<vmem>>, %arg5: memref<4x20x20xf32, #tpu.memory_space<vmem>>) attributes {dimension_semantics = [#tpu.dimension_semantics<parallel>], iteration_bounds = array<i64: 2>, scalar_prefetch = 0 : i64, scratch_operands = 2 : i64, tpu.core_type = #tpu.core_type<tc>, window_params = [{transform_indices = @transform_0, window_bounds = array<i64: 4, 16, 16>}, {transform_indices = @transform_1, window_bounds = array<i64: 4, 16, 16>}, {transform_indices = @transform_2, window_bounds = array<i64: 1, 1, 128>}]} {
    %c0 = arith.constant 0 : index
    %c0_0 = arith.constant 0 : index
    %c0_1 = arith.constant 0 : index
    %0 = vector.load %arg1[%c0, %c0_0, %c0_1] : memref<4x16x16xf32, #tpu.memory_space<vmem>>, vector<4x16x16xf32>
    %c0_2 = arith.constant 0 : index
    %c0_3 = arith.constant 0 : index
    %c0_4 = arith.constant 0 : index
    %1 = vector.load %arg2[%c0_2, %c0_3, %c0_4] : memref<4x16x16xf32, #tpu.memory_space<vmem>>, vector<4x16x16xf32>
    %cst = arith.constant 0.000000e+00 : f32
    %2 = vector.broadcast %cst : f32 to vector<4x20x20xf32>
    %c0_5 = arith.constant 0 : index
    %c0_6 = arith.constant 0 : index
    %c0_7 = arith.constant 0 : index
    %3 = vector.load %arg4[%c0_5, %c0_6, %c0_7] : memref<4x20x20xf32, #tpu.memory_space<vmem>>, vector<4x20x20xf32>
    tpu.vector_store %arg4[%c0_5, %c0_6, %c0_7], %2 {strides = array<i32>} : memref<4x20x20xf32, #tpu.memory_space<vmem>>, vector<4x20x20xf32>,
    %cst_8 = arith.constant 0.000000e+00 : f32
    %4 = vector.broadcast %cst_8 : f32 to vector<4x20x20xf32>
    %c0_9 = arith.constant 0 : index
    %c0_10 = arith.constant 0 : index
    %c0_11 = arith.constant 0 : index
    %5 = vector.load %arg5[%c0_9, %c0_10, %c0_11] : memref<4x20x20xf32, #tpu.memory_space<vmem>>, vector<4x20x20xf32>
    tpu.vector_store %arg5[%c0_9, %c0_10, %c0_11], %4 {strides = array<i32>} : memref<4x20x20xf32, #tpu.memory_space<vmem>>, vector<4x20x20xf32>,
    %6 = arith.mulf %0, %1 : vector<4x16x16xf32>
    %c0_12 = arith.constant 0 : index
    %c2 = arith.constant 2 : index
    %c2_13 = arith.constant 2 : index
    %7 = vector.load %arg4[%c0_12, %c2, %c2_13] : memref<4x20x20xf32, #tpu.memory_space<vmem>>, vector<4x16x16xf32>
    tpu.vector_store %arg4[%c0_12, %c2, %c2_13], %6 {strides = array<i32>} : memref<4x20x20xf32, #tpu.memory_space<vmem>>, vector<4x16x16xf32>,
    %8 = arith.addf %0, %1 : vector<4x16x16xf32>
    %c0_14 = arith.constant 0 : index
    %c2_15 = arith.constant 2 : index
    %c2_16 = arith.constant 2 : index
    %9 = vector.load %arg5[%c0_14, %c2_15, %c2_16] : memref<4x20x20xf32, #tpu.memory_space<vmem>>, vector<4x16x16xf32>
    tpu.vector_store %arg5[%c0_14, %c2_15, %c2_16], %8 {strides = array<i32>} : memref<4x20x20xf32, #tpu.memory_space<vmem>>, vector<4x16x16xf32>,
    %c0_17 = arith.constant 0 : index
    %c0_18 = arith.constant 0 : index
    %c0_19 = arith.constant 0 : index
    %10 = vector.load %arg4[%c0_17, %c0_18, %c0_19] : memref<4x20x20xf32, #tpu.memory_space<vmem>>, vector<4x20x20xf32>
    %11 = vector.extract_strided_slice %10 {offsets = [0, 0, 2], sizes = [4, 20, 16], strides = [1, 1, 1]} : vector<4x20x20xf32> to vector<4x20x16xf32>
    %12 = vector.extract_strided_slice %10 {offsets = [0, 0, 1], sizes = [4, 20, 16], strides = [1, 1, 1]} : vector<4x20x20xf32> to vector<4x20x16xf32>
    %13 = arith.addf %11, %12 : vector<4x20x16xf32>
    %14 = vector.extract_strided_slice %10 {offsets = [0, 0, 3], sizes = [4, 20, 16], strides = [1, 1, 1]} : vector<4x20x20xf32> to vector<4x20x16xf32>
    %15 = arith.addf %13, %14 : vector<4x20x16xf32>
    %16 = vector.extract_strided_slice %10 {offsets = [0, 0, 0], sizes = [4, 20, 16], strides = [1, 1, 1]} : vector<4x20x20xf32> to vector<4x20x16xf32>
    %17 = arith.addf %15, %16 : vector<4x20x16xf32>
    %18 = vector.extract_strided_slice %10 {offsets = [0, 0, 4], sizes = [4, 20, 16], strides = [1, 1, 1]} : vector<4x20x20xf32> to vector<4x20x16xf32>
    %19 = arith.addf %17, %18 : vector<4x20x16xf32>
    %20 = vector.extract_strided_slice %11 {offsets = [0, 2, 0], sizes = [4, 16, 16], strides = [1, 1, 1]} : vector<4x20x16xf32> to vector<4x16x16xf32>
    %21 = vector.extract_strided_slice %15 {offsets = [0, 2, 0], sizes = [4, 16, 16], strides = [1, 1, 1]} : vector<4x20x16xf32> to vector<4x16x16xf32>
    %22 = vector.extract_strided_slice %15 {offsets = [0, 1, 0], sizes = [4, 16, 16], strides = [1, 1, 1]} : vector<4x20x16xf32> to vector<4x16x16xf32>
    %23 = arith.addf %21, %22 : vector<4x16x16xf32>
    %24 = vector.extract_strided_slice %15 {offsets = [0, 3, 0], sizes = [4, 16, 16], strides = [1, 1, 1]} : vector<4x20x16xf32> to vector<4x16x16xf32>
    %25 = arith.addf %23, %24 : vector<4x16x16xf32>
    %26 = vector.extract_strided_slice %19 {offsets = [0, 2, 0], sizes = [4, 16, 16], strides = [1, 1, 1]} : vector<4x20x16xf32> to vector<4x16x16xf32>
    %27 = vector.extract_strided_slice %19 {offsets = [0, 1, 0], sizes = [4, 16, 16], strides = [1, 1, 1]} : vector<4x20x16xf32> to vector<4x16x16xf32>
    %28 = arith.addf %26, %27 : vector<4x16x16xf32>
    %29 = vector.extract_strided_slice %19 {offsets = [0, 3, 0], sizes = [4, 16, 16], strides = [1, 1, 1]} : vector<4x20x16xf32> to vector<4x16x16xf32>
    %30 = arith.addf %28, %29 : vector<4x16x16xf32>
    %31 = vector.extract_strided_slice %19 {offsets = [0, 0, 0], sizes = [4, 16, 16], strides = [1, 1, 1]} : vector<4x20x16xf32> to vector<4x16x16xf32>
    %32 = arith.addf %30, %31 : vector<4x16x16xf32>
    %33 = vector.extract_strided_slice %19 {offsets = [0, 4, 0], sizes = [4, 16, 16], strides = [1, 1, 1]} : vector<4x20x16xf32> to vector<4x16x16xf32>
    %34 = arith.addf %32, %33 : vector<4x16x16xf32>
    %c0_20 = arith.constant 0 : index
    %c0_21 = arith.constant 0 : index
    %c0_22 = arith.constant 0 : index
    %35 = vector.load %arg5[%c0_20, %c0_21, %c0_22] : memref<4x20x20xf32, #tpu.memory_space<vmem>>, vector<4x20x20xf32>
    %36 = vector.extract_strided_slice %35 {offsets = [0, 0, 2], sizes = [4, 20, 16], strides = [1, 1, 1]} : vector<4x20x20xf32> to vector<4x20x16xf32>
    %37 = vector.extract_strided_slice %35 {offsets = [0, 0, 1], sizes = [4, 20, 16], strides = [1, 1, 1]} : vector<4x20x20xf32> to vector<4x20x16xf32>
    %38 = arith.addf %36, %37 : vector<4x20x16xf32>
    %39 = vector.extract_strided_slice %35 {offsets = [0, 0, 3], sizes = [4, 20, 16], strides = [1, 1, 1]} : vector<4x20x20xf32> to vector<4x20x16xf32>
    %40 = arith.addf %38, %39 : vector<4x20x16xf32>
    %41 = vector.extract_strided_slice %35 {offsets = [0, 0, 0], sizes = [4, 20, 16], strides = [1, 1, 1]} : vector<4x20x20xf32> to vector<4x20x16xf32>
    %42 = arith.addf %40, %41 : vector<4x20x16xf32>
    %43 = vector.extract_strided_slice %35 {offsets = [0, 0, 4], sizes = [4, 20, 16], strides = [1, 1, 1]} : vector<4x20x20xf32> to vector<4x20x16xf32>
    %44 = arith.addf %42, %43 : vector<4x20x16xf32>
    %45 = vector.extract_strided_slice %36 {offsets = [0, 2, 0], sizes = [4, 16, 16], strides = [1, 1, 1]} : vector<4x20x16xf32> to vector<4x16x16xf32>
    %46 = vector.extract_strided_slice %40 {offsets = [0, 2, 0], sizes = [4, 16, 16], strides = [1, 1, 1]} : vector<4x20x16xf32> to vector<4x16x16xf32>
    %47 = vector.extract_strided_slice %40 {offsets = [0, 1, 0], sizes = [4, 16, 16], strides = [1, 1, 1]} : vector<4x20x16xf32> to vector<4x16x16xf32>
    %48 = arith.addf %46, %47 : vector<4x16x16xf32>
    %49 = vector.extract_strided_slice %40 {offsets = [0, 3, 0], sizes = [4, 16, 16], strides = [1, 1, 1]} : vector<4x20x16xf32> to vector<4x16x16xf32>
    %50 = arith.addf %48, %49 : vector<4x16x16xf32>
    %51 = vector.extract_strided_slice %44 {offsets = [0, 2, 0], sizes = [4, 16, 16], strides = [1, 1, 1]} : vector<4x20x16xf32> to vector<4x16x16xf32>
    %52 = vector.extract_strided_slice %44 {offsets = [0, 1, 0], sizes = [4, 16, 16], strides = [1, 1, 1]} : vector<4x20x16xf32> to vector<4x16x16xf32>
    %53 = arith.addf %51, %52 : vector<4x16x16xf32>
    %54 = vector.extract_strided_slice %44 {offsets = [0, 3, 0], sizes = [4, 16, 16], strides = [1, 1, 1]} : vector<4x20x16xf32> to vector<4x16x16xf32>
    %55 = arith.addf %53, %54 : vector<4x16x16xf32>
    %56 = vector.extract_strided_slice %44 {offsets = [0, 0, 0], sizes = [4, 16, 16], strides = [1, 1, 1]} : vector<4x20x16xf32> to vector<4x16x16xf32>
    %57 = arith.addf %55, %56 : vector<4x16x16xf32>
    %58 = vector.extract_strided_slice %44 {offsets = [0, 4, 0], sizes = [4, 16, 16], strides = [1, 1, 1]} : vector<4x20x16xf32> to vector<4x16x16xf32>
    %59 = arith.addf %57, %58 : vector<4x16x16xf32>
    %cst_23 = arith.constant 0.000000e+00 : f32
    %60 = vector.broadcast %cst_23 : f32 to vector<4x16x16xf32>
    %cst_24 = arith.constant 1.000000e+00 : f32
    %61 = vector.broadcast %cst_24 : f32 to vector<4x16x16xf32>
    %62 = arith.mulf %20, %61 : vector<4x16x16xf32>
    %cst_25 = arith.constant 1.000000e+00 : f32
    %63 = vector.broadcast %cst_25 : f32 to vector<4x16x16xf32>
    %64 = arith.mulf %45, %63 : vector<4x16x16xf32>
    %cst_26 = arith.constant 2.000000e+00 : f32
    %65 = vector.broadcast %cst_26 : f32 to vector<4x16x16xf32>
    %66 = arith.mulf %65, %62 : vector<4x16x16xf32>
    %cst_27 = arith.constant 9.99999997E-7 : f32
    %67 = vector.broadcast %cst_27 : f32 to vector<4x16x16xf32>
    %68 = arith.addf %66, %67 : vector<4x16x16xf32>
    %cst_28 = arith.constant 9.99999997E-7 : f32
    %69 = vector.broadcast %cst_28 : f32 to vector<4x16x16xf32>
    %70 = arith.addf %64, %69 : vector<4x16x16xf32>
    %71 = arith.divf %68, %70 : vector<4x16x16xf32>
    %72 = arith.addf %60, %71 : vector<4x16x16xf32>
    %cst_29 = arith.constant 0.111111112 : f32
    %73 = vector.broadcast %cst_29 : f32 to vector<4x16x16xf32>
    %74 = arith.mulf %25, %73 : vector<4x16x16xf32>
    %cst_30 = arith.constant 0.111111112 : f32
    %75 = vector.broadcast %cst_30 : f32 to vector<4x16x16xf32>
    %76 = arith.mulf %50, %75 : vector<4x16x16xf32>
    %cst_31 = arith.constant 2.000000e+00 : f32
    %77 = vector.broadcast %cst_31 : f32 to vector<4x16x16xf32>
    %78 = arith.mulf %77, %74 : vector<4x16x16xf32>
    %cst_32 = arith.constant 9.99999997E-7 : f32
    %79 = vector.broadcast %cst_32 : f32 to vector<4x16x16xf32>
    %80 = arith.addf %78, %79 : vector<4x16x16xf32>
    %cst_33 = arith.constant 9.99999997E-7 : f32
    %81 = vector.broadcast %cst_33 : f32 to vector<4x16x16xf32>
    %82 = arith.addf %76, %81 : vector<4x16x16xf32>
    %83 = arith.divf %80, %82 : vector<4x16x16xf32>
    %84 = arith.addf %72, %83 : vector<4x16x16xf32>
    %cst_34 = arith.constant 4.000000e-02 : f32
    %85 = vector.broadcast %cst_34 : f32 to vector<4x16x16xf32>
    %86 = arith.mulf %34, %85 : vector<4x16x16xf32>
    %cst_35 = arith.constant 4.000000e-02 : f32
    %87 = vector.broadcast %cst_35 : f32 to vector<4x16x16xf32>
    %88 = arith.mulf %59, %87 : vector<4x16x16xf32>
    %cst_36 = arith.constant 2.000000e+00 : f32
    %89 = vector.broadcast %cst_36 : f32 to vector<4x16x16xf32>
    %90 = arith.mulf %89, %86 : vector<4x16x16xf32>
    %cst_37 = arith.constant 9.99999997E-7 : f32
    %91 = vector.broadcast %cst_37 : f32 to vector<4x16x16xf32>
    %92 = arith.addf %90, %91 : vector<4x16x16xf32>
    %cst_38 = arith.constant 9.99999997E-7 : f32
    %93 = vector.broadcast %cst_38 : f32 to vector<4x16x16xf32>
    %94 = arith.addf %88, %93 : vector<4x16x16xf32>
    %95 = arith.divf %92, %94 : vector<4x16x16xf32>
    %96 = arith.addf %84, %95 : vector<4x16x16xf32>
    %97 = vector.shape_cast %96 : vector<4x16x16xf32> to vector<1x4x16x16xf32>
    %cst_39 = arith.constant dense<0.000000e+00> : vector<1xf32>
    %98 = vector.multi_reduction <add>, %97, %cst_39 [1, 2, 3] : vector<1x4x16x16xf32> to vector<1xf32>
    %99 = vector.shape_cast %98 : vector<1xf32> to vector<1x1x1x1xf32>
    %100 = vector.extract %99[0, 0, 0, 0] : f32 from vector<1x1x1x1xf32>
    %101 = vector.broadcast %100 : f32 to vector<1x1x128xf32>
    %c0_40 = arith.constant 0 : index
    %c0_41 = arith.constant 0 : index
    %c0_42 = arith.constant 0 : index
    %102 = vector.load %arg3[%c0_40, %c0_41, %c0_42] : memref<1x1x128xf32, #tpu.memory_space<vmem>>, vector<1x1x128xf32>
    tpu.vector_store %arg3[%c0_40, %c0_41, %c0_42], %101 {strides = array<i32>} : memref<1x1x128xf32, #tpu.memory_space<vmem>>, vector<1x1x128xf32>,
    return
  }
  func.func @transform_0(%arg0: i32) -> (i32, i32, i32) {
    %c0_i32 = arith.constant 0 : i32
    %c0_i32_0 = arith.constant 0 : i32
    %c0_i32_1 = arith.constant 0 : i32
    return %arg0, %c0_i32, %c0_i32_0 : i32, i32, i32
  }
  func.func @transform_1(%arg0: i32) -> (i32, i32, i32) {
    %c0_i32 = arith.constant 0 : i32
    %c0_i32_0 = arith.constant 0 : i32
    %c0_i32_1 = arith.constant 0 : i32
    return %arg0, %c0_i32, %c0_i32_0 : i32, i32, i32
  }
  func.func @transform_2(%arg0: i32) -> (i32, i32, i32) {
    %c0_i32 = arith.constant 0 : i32
    %c0_i32_0 = arith.constant 0 : i32
    %c0_i32_1 = arith.constant 0 : i32
    return %arg0, %c0_i32, %c0_i32_0 : i32, i32, i32
  }
}

</mosaic_0001>

<bundles_post_ra>
// kernel: tpu_custom_call.1
= control target key start
LH: loop header
LB: loop body
LE: loop exit
PB: predicated region body
PF: predicated region fallthrough
CT: control target
= control target key end

     0   :  { %7 = vsyncpa [#allocation5], 0  ;;  %s3460_s0 = inlined_call_operand.hbm [shape: f32[8,16,16], index: 0, kind: input, shape index: {}]   ;;  %s3461_s1 = inlined_call_operand.hbm [shape: f32[8,16,16], index: 1, kind: input, shape index: {}]   ;;  %s3462_s2 = inlined_call_operand.hbm [shape: f32[2,1,128], index: 2, kind: output, shape index: {}]  }
   0x1   :  { %9 = vsyncpa [#allocation5 + $0x1], 0 }
   0x2   :  { %10 = vsyncpa [#allocation8], 0 }
   0x3   :  { %12 = vsyncpa [#allocation8 + $0x1], 0 }
   0x4   :  { %13 = vsyncpa [#allocation6], 0 }
   0x5   :  { %15 = vsyncpa [#allocation6 + $0x1], 0  ;;  %s2099_s9 = smov 0   ;;  %s2101_s10 = smov 0  }
   0x6   :  { %s2103_s11 = smov 0   ;;  %s2105_s12 = smov 0  }
   0x7 LB: > { %s2120_s13 = sadd.s32 4294967295, %s2072_s12   ;;  %s1789_s14 = sadd.s32 4294967294, %s2072_s12   ;;  %s2072_s12 = sphi %s2105_s12, %s3536_s12   ;;  %s2068_s11 = sphi %s2103_s11, %s3535_s11   ;;  %s2064_s10 = sphi %s2101_s10, %s3534_s10   ;;  %s2060_s9 = sphi %s2099_s9, %s3533_s9  }
   0x8   : > { %s2124_s15 = sadd.s32 1, %s2072_s12   ;;  %s28_s16 = sadd.s32 1, %s2068_s11 }
   0x9   : > { %s25_s17 = ssub.s32 %s2072_s12, %s2124_s15  ;;  %p35_p0 = scmp.ne.s32.totalorder %s2068_s11, %s2064_s10 }
   0xa   : > { %p26_p1 = scmp.eq.s32.totalorder %s25_s17, 0  ;;  %p36_p2 = scmp.eq.s32.totalorder %s2072_s12, 0 }
   0xb   : > { %p41_p3 = scmp.ne.s32.totalorder %s2064_s10, %s2060_s9  ;;  %p42_p4 = scmp.eq.s32.totalorder %s2120_s13, 0 }
   0xc   : > { %s2136_s18 = scalar_select %p26_p1, %s2068_s11, %s28_s16  }
   0xd   : > { %p2138_p5 = por %p36_p2, %p35_p0  ;;  %p2142_p6 = por %p42_p4, %p41_p3 }
   0xe   : > { %p91_p7 = scmp.eq.s32.totalorder %s2120_s13, 1  ;;  %p97_p8 = scmp.eq.s32.totalorder %s1789_s14, 1 }
   0xf   : > { %s3483_s20 = scalar_select %p2142_p6, 1, 0 }
  0x10   : > { %p1829_p10 = scmp.lt.s32.totalorder %s2072_s12, 2  ;;  %p2149_p11 = por %p91_p7, %p35_p0 }
  0x11   : > { %p2153_p12 = por %p97_p8, %p41_p3  ;;  %s2158_s23 = sand.u32 1, %s2068_s11  }
  0x12   : > { %s3484_s21 = scalar_select %p2149_p11, 1, 0 }
  0x13   : > { %s3485_s22 = scalar_select %p2153_p12, 1, 0 }
  0x14   : > { %s1807_s24 = sshll.u32 %s2072_s12, 10  ;;  %s1792_s25 = sshll.u32 %s2158_s23, 6 }
  0x15   : > { %s2167_s28 = scalar_lea.hbm %s3460_s0, %s1807_s24  ;;  %s121_s29 = scalar_lea.vmem [#allocation4], %s1792_s25 }
  0x16   : > { %s129_s30 = sshll.u32 %s121_s29, 4  ;;  %p2173_p13 = pnand %p1829_p10, %p2138_p5  ;;  %s2177_s30 = int_to_ptr.vmem [resolvable:$true] %s129_s30 }
  0x17   : > { %s118_s4 = scalar_lea.sflag [#allocation5], %s2158_s23  ;;  %s1948_s5 = scalar_lea.hbm %s2167_s28, 1024 }
  0x18   : > { %p1949_p0 = scmp.ne.s32.totalorder %s2167_s28, %s1948_s5  ;;  %p1950_p1 = pneg %p2173_p13 }
  0x19   : > { %s1953_s8 = scalar_lea.hbm %s3460_s0, 2048  ;;  %p1954_p4 = scmp.lt.s32.totalorder %s2167_s28, %s3460_s0 }
  0x1a   : > { %p1951_p2 = pnand %p1950_p1, %p1949_p0  ;;  %p1955_p5 = scmp.lt.s32.totalorder %s1953_s8, %s1948_s5 }
  0x1c   : > { %p1952_p3 = pneg %p1951_p2  ;;  %p1956_p7 = por %p1955_p5, %p1954_p4 }
  0x1e   : > { %p1957_p8 = pnand %p1956_p7, %p1952_p3 }
  0x20   : > { %1960 = shalt.err (!%p1957_p8)
}
  0x21   : > { %s1961_s17 = scalar_lea.vmem %s2177_s30, 1024  ;;  %s2074_s19 = smov [#allocation4]  }
  0x22   : > { %p1962_p10 = scmp.ne.s32.totalorder %s2177_s30, %s1961_s17  ;;  %s1966_s26 = sshll.u32 %s2074_s19, 4  ;;  %s1967_s26 = int_to_ptr.vmem [resolvable:$false] %s1966_s26 }
  0x23   : > { %s1968_s27 = scalar_lea.vmem %s1967_s26, 2048  ;;  %p1969_p9 = scmp.lt.s32.totalorder %s2177_s30, %s1967_s26 }
  0x24   : > { %p1964_p0 = pnand %p1962_p10, %p1950_p1  ;;  %p1970_p12 = scmp.lt.s32.totalorder %s1968_s27, %s1961_s17 }
  0x26   : > { %p1965_p2 = pneg %p1964_p0  ;;  %p1971_p11 = por %p1970_p12, %p1969_p9 }
  0x28   : > { %p1972_p4 = pnand %p1971_p11, %p1965_p2 }
  0x2a   : > { %1975 = shalt.err (!%p1972_p4)
}
  0x2b   : > { %s2075_s29 = smov 128   ;;  %s2076_s5 = smov 8  }
  0x2c   : > { %1821 = dma.hbm_to_vmem [thread:$0]  (!%p2173_p13), %s2167_s28, 1024, %s2177_s30, %s118_s4, %s2075_s29, %s2075_s29, %s2076_s5  }
  0x2d   : > { %p1800_p9 = scmp.ge.s32.totalorder %s2072_s12, 1  ;;  %p159_p11 = scmp.lt.s32.totalorder %s2072_s12, 3 }
  0x2e   : > { %s2220_s14 = scalar_lea.hbm %s3461_s1, %s1807_s24  ;;  %s143_s16 = scalar_lea.vmem [#allocation7], %s1792_s25 }
  0x2f   : > { %p2211_p12 = pnand %p1800_p9, %p159_p11  ;;  %s151_s17 = sshll.u32 %s143_s16, 4  ;;  %s2224_s17 = int_to_ptr.vmem [resolvable:$true] %s151_s17 }
  0x30   : > { %s140_s28 = scalar_lea.sflag [#allocation8], %s2158_s23  ;;  %s1976_s30 = scalar_lea.hbm %s2220_s14, 1024 }
  0x31   : > { %p1977_p3 = scmp.ne.s32.totalorder %s2220_s14, %s1976_s30  ;;  %s1981_s24 = scalar_lea.hbm %s3461_s1, 2048 }
  0x32   : > { %p1982_p8 = scmp.lt.s32.totalorder %s2220_s14, %s3461_s1  ;;  %p1983_p10 = scmp.lt.s32.totalorder %s1981_s24, %s1976_s30 }
  0x33   : > { %p1979_p5 = pnand %p1977_p3, %p1950_p1 }
  0x34   : > { %p1984_p0 = por %p1983_p10, %p1982_p8 }
  0x35   : > { %p1980_p7 = pneg %p1979_p5 }
  0x37   : > { %p1985_p2 = pnand %p1984_p0, %p1980_p7 }
  0x39   : > { %1988 = shalt.err (!%p1985_p2)
}
  0x3a   : > { %s1989_s23 = scalar_lea.vmem %s2224_s17, 1024  ;;  %s2077_s25 = smov [#allocation7]  }
  0x3b   : > { %p1990_p4 = scmp.ne.s32.totalorder %s2224_s17, %s1989_s23  ;;  %s1994_s7 = sshll.u32 %s2077_s25, 4  ;;  %s1995_s7 = int_to_ptr.vmem [resolvable:$false] %s1994_s7 }
  0x3c   : > { %s1996_s8 = scalar_lea.vmem %s1995_s7, 2048  ;;  %p1997_p3 = scmp.lt.s32.totalorder %s2224_s17, %s1995_s7 }
  0x3d   : > { %p1992_p9 = pnand %p1990_p4, %p1950_p1  ;;  %p1998_p5 = scmp.lt.s32.totalorder %s1996_s8, %s1989_s23 }
  0x3f   : > { %p1993_p11 = pneg %p1992_p9  ;;  %p1999_p6 = por %p1998_p5, %p1997_p3 }
  0x41   : > { %p2000_p8 = pnand %p1999_p6, %p1993_p11 }
  0x43   : > { %2003 = shalt.err (!%p2000_p8)
}
  0x44   : > { %1824 = dma.hbm_to_vmem [thread:$0]  (!%p2173_p13), %s2220_s14, 1024, %s2224_s17, %s140_s28, %s2075_s29, %s2075_s29, %s2076_s5  }
  0x45   : > { %163 = sbr.rel (%p2211_p12) target bundleno = 881 (0x371), region = 28 }
  0x4a   : > { %s2255_s16 = sand.u32 1, %s2064_s10   ;;  %p3488_p6 = scmp.ne.s32.totalorder %s3483_s20, 0 }
  0x4b   : > { %s1801_s30 = sshll.u32 %s2255_s16, 6  ;;  %s166_s4 = scalar_lea.sflag [#allocation5], %s2255_s16 }
  0x4c   : > { %s2259_s19 = scalar_lea.vmem [#allocation4], %s1801_s30 }
  0x4d   : > { %2047 = dma.done.wait (%p3488_p6), %s166_s4, 1024  }
  0x4e   : > { %2049 = vsyncadd (%p3488_p6), %s166_s4, 4294966272  ;;  %s175_s3 = scalar_lea.sflag [#allocation8], %s2255_s16  ;;  %s2266_s29 = scalar_lea.vmem [#allocation7], %s1801_s30 }
  0x4f   : > { %2051 = dma.done.wait (%p3488_p6), %s175_s3, 1024  }
  0x50   : > { %2053 = vsyncadd (%p3488_p6), %s175_s3, 4294966272  ;;  %vm221_vm0 = vcmask 162816   ;;  %vm224_vm1 = vcmask 158720   ;;  %v2078_v0 = vmov 0.0   ;;  %v207_v1 = vld [vmem:[%s2259_s19 + $0x10] sm:$0xff]  ;;  %v205_v3 = vld [vmem:[%s2259_s19] sm:$0xff] }
  0x51   : > { %238 = vst.msk [vmem:[#allocation3 + $0x18] sm:$0xff] %vm221_vm0, %v2078_v0  ;;  %239 = vst.msk [vmem:[#allocation3 + $0x20] sm:$0xff] %vm221_vm0, %v2078_v0  ;;  %v215_v2 = vld [vmem:[%s2266_s29 + $0x10] sm:$0xff]  ;;  %v213_v5 = vld [vmem:[%s2266_s29] sm:$0xff]  ;;  %s2079_s20 = smov 2   ;;  %vm287_vm2 = vcmask 146448  }
  0x52   : > { %222 = vst.msk [vmem:[#allocation2] sm:$0xff] %vm221_vm0, %v2078_v0  ;;  %223 = vst.msk [vmem:[#allocation2 + $0x8] sm:$0xff] %vm221_vm0, %v2078_v0  ;;  %v298_v4 = vadd.f32 %v215_v2, %v207_v1  ;;  %v208_v6 = vld [vmem:[%s2259_s19 + $0x18] sm:$0xff]  ;;  %v296_v8 = vadd.f32 %v213_v5, %v205_v3  ;;  %v206_v9 = vld [vmem:[%s2259_s19 + $0x8] sm:$0xff]  ;;  %v247_v26 = vmul.f32 %v213_v5, %v205_v3  ;;  %s2080_s5 = smov 1   ;;  %s2081_s6 = smov 127  }
  0x53   : > { %226 = vst.msk [vmem:[#allocation2 + $0x18] sm:$0xff] %vm221_vm0, %v2078_v0  ;;  %227 = vst.msk [vmem:[#allocation2 + $0x20] sm:$0xff] %vm221_vm0, %v2078_v0  ;;  %v216_v7 = vld [vmem:[%s2266_s29 + $0x18] sm:$0xff]  ;;  %v214_v10 = vld [vmem:[%s2266_s29 + $0x8] sm:$0xff]  ;;  %v249_v28 = vmul.f32 %v215_v2, %v207_v1  ;;  %s2082_s14 = smov 126   ;;  %vm572_vm3 = vcmask 1040384  }
  0x54   : > { %229 = vst.msk [vmem:[#allocation2 + $0x30] sm:$0xff] %vm221_vm0, %v2078_v0  ;;  %230 = vst.msk [vmem:[#allocation2 + $0x38] sm:$0xff] %vm221_vm0, %v2078_v0  ;;  %316 = vrot.lane.b32.xlu1 %v298_v4, %s2079_s20  ;;  %v299_v11 = vadd.f32 %v216_v7, %v208_v6  ;;  %312 = vrot.lane.b32.xlu0 %v296_v8, %s2079_s20  ;;  %v297_v12 = vadd.f32 %v214_v10, %v206_v9  ;;  %v210_v13 = vld [vmem:[%s2259_s19 + $0x28] sm:$0xff]  ;;  %v209_v15 = vld [vmem:[%s2259_s19 + $0x20] sm:$0xff]  ;;  %vm617_vm4 = vcmask 1046528   ;;  %vm799_vm5 = vcmask 1045504  }
  0x55   : > { %232 = vst.msk [vmem:[#allocation2 + $0x48] sm:$0xff] %vm221_vm0, %v2078_v0  ;;  %233 = vst.msk [vmem:[#allocation2 + $0x50] sm:$0xff] %vm221_vm0, %v2078_v0  ;;  %v218_v14 = vld [vmem:[%s2266_s29 + $0x28] sm:$0xff]  ;;  %v217_v16 = vld [vmem:[%s2266_s29 + $0x20] sm:$0xff]  ;;  %v248_v25 = vmul.f32 %v214_v10, %v206_v9  ;;  %v250_v27 = vmul.f32 %v216_v7, %v208_v6  ;;  %vm762_vm6 = vcmask 1041408   ;;  %vm1660_vm7 = vcmask 130048  }
  0x56   : > { %235 = vst.msk [vmem:[#allocation3] sm:$0xff] %vm221_vm0, %v2078_v0  ;;  %236 = vst.msk [vmem:[#allocation3 + $0x8] sm:$0xff] %vm221_vm0, %v2078_v0  ;;  %v301_v17 = vadd.f32 %v218_v14, %v210_v13  ;;  %v300_v18 = vadd.f32 %v217_v16, %v209_v15  ;;  %v212_v19 = vld [vmem:[%s2259_s19 + $0x38] sm:$0xff]  ;;  %v211_v21 = vld [vmem:[%s2259_s19 + $0x30] sm:$0xff]  ;;  %v252_v29 = vmul.f32 %v218_v14, %v210_v13  ;;  %s202_s17 = scalar_lea.vmem [#allocation9], %s2255_s16  ;;  %s1803_s24 = sshll.u32 %s2120_s13, 4 }
  0x57   : > { %241 = vst.msk [vmem:[#allocation3 + $0x30] sm:$0xff] %vm221_vm0, %v2078_v0  ;;  %242 = vst.msk [vmem:[#allocation3 + $0x38] sm:$0xff] %vm221_vm0, %v2078_v0  ;;  %v220_v20 = vld [vmem:[%s2266_s29 + $0x38] sm:$0xff]  ;;  %v219_v22 = vld [vmem:[%s2266_s29 + $0x30] sm:$0xff]  ;;  %v251_v30 = vmul.f32 %v217_v16, %v209_v15  ;;  %s1700_s28 = sshll.u32 %s202_s17, 4  ;;  %s1698_s25 = scalar_lea.hbm %s3462_s2, %s1803_s24  ;;  %s3420_s28 = int_to_ptr.vmem [resolvable:$true] %s1700_s28 }
  0x58   : > { %244 = vst.msk [vmem:[#allocation3 + $0x48] sm:$0xff] %vm221_vm0, %v2078_v0  ;;  %245 = vst.msk [vmem:[#allocation3 + $0x50] sm:$0xff] %vm221_vm0, %v2078_v0  ;;  %318 = vrot.lane.b32.xlu1 %v299_v11, %s2079_s20  ;;  %314 = vrot.lane.b32.xlu0 %v297_v12, %s2079_s20  ;;  %v303_v23 = vadd.f32 %v220_v20, %v212_v19  ;;  %v302_v24 = vadd.f32 %v219_v22, %v211_v21  ;;  %s1688_s7 = scalar_lea.sflag [#allocation6], %s2255_s16  ;;  %s2004_s8 = scalar_lea.vmem %s3420_s28, 16 }
  0x59   : > { %240 = vst.msk [vmem:[#allocation3 + $0x28] sm:$0xf] %vm224_vm1, %v2078_v0  ;;  %225 = vst.msk [vmem:[#allocation2 + $0x10] sm:$0xf] %vm224_vm1, %v2078_v0  ;;  %v254_v31 = vmul.f32 %v220_v20, %v212_v19  ;;  %v253_v32 = vmul.f32 %v219_v22, %v211_v21  ;;  %p2005_p13 = scmp.ne.s32.totalorder %s3420_s28, %s2004_s8  ;;  %p3530_p1 = scmp.ne.s32.totalorder %s3484_s21, 0 }
  0x5a   : > { %228 = vst.msk [vmem:[#allocation2 + $0x28] sm:$0xf] %vm224_vm1, %v2078_v0  ;;  %231 = vst.msk [vmem:[#allocation2 + $0x40] sm:$0xf] %vm224_vm1, %v2078_v0  ;;  %s2083_s30 = smov [#allocation9]  }
  0x5b   : > { %234 = vst.msk [vmem:[#allocation2 + $0x58] sm:$0xf] %vm224_vm1, %v2078_v0  ;;  %237 = vst.msk [vmem:[#allocation3 + $0x10] sm:$0xf] %vm224_vm1, %v2078_v0  ;;  %p2006_p12 = pnand %p2005_p13, %p3530_p1  ;;  %s2008_s13 = sshll.u32 %s2083_s30, 4  ;;  %s2009_s13 = int_to_ptr.vmem [resolvable:$false] %s2008_s13 }
  0x5c   : > { %243 = vst.msk [vmem:[#allocation3 + $0x40] sm:$0xf] %vm224_vm1, %v2078_v0  ;;  %246 = vst.msk [vmem:[#allocation3 + $0x58] sm:$0xf] %vm224_vm1, %v2078_v0  ;;  %322 = vrot.lane.b32.xlu1 %v301_v17, %s2079_s20  ;;  %320 = vrot.lane.b32.xlu0 %v300_v18, %s2079_s20  ;;  %s2010_s4 = scalar_lea.vmem %s2009_s13, 32  ;;  %p2011_p10 = scmp.lt.s32.totalorder %s3420_s28, %s2009_s13 }
  0x5d   : > { %p2007_p7 = pneg %p2006_p12  ;;  %p2012_p0 = scmp.lt.s32.totalorder %s2010_s4, %s2004_s8 }
  0x5f   : > { %p2013_p2 = por %p2012_p0, %p2011_p10 }
  0x60   : > { %326 = vrot.lane.b32.xlu1 %v303_v23, %s2079_s20  ;;  %324 = vrot.lane.b32.xlu0 %v302_v24, %s2079_s20 }
  0x61   : > { %p2014_p4 = pnand %p2013_p2, %p2007_p7 }
  0x64   : > { %265 = vrot.lane.b32.xlu1 %v248_v25, %s2079_s20  ;;  %263 = vrot.lane.b32.xlu0 %v247_v26, %s2079_s20 }
  0x68   : > { %269 = vrot.lane.b32.xlu1 %v250_v27, %s2079_s20  ;;  %267 = vrot.lane.b32.xlu0 %v249_v28, %s2079_s20 }
  0x6c   : > { %273 = vrot.lane.b32.xlu1 %v252_v29, %s2079_s20  ;;  %271 = vrot.lane.b32.xlu0 %v251_v30, %s2079_s20 }
  0x70   : > { %277 = vrot.lane.b32.xlu1 %v254_v31, %s2079_s20  ;;  %275 = vrot.lane.b32.xlu0 %v253_v32, %s2079_s20 }
  0xc6   : > { %v317_v33 = vpop.permute.xlu1 %316  ;;  %v313_v34 = vpop.permute.xlu0 %312 }
  0xc7   : > { %338 = vst.msk [vmem:[#allocation3 + $0x1a] sm:$0xff] %vm287_vm2, %v317_v33  ;;  %336 = vst.msk [vmem:[#allocation3 + $0x2] sm:$0xff] %vm287_vm2, %v313_v34 }
  0xca   : > { %v319_v35 = vpop.permute.xlu1 %318  ;;  %v315_v36 = vpop.permute.xlu0 %314 }
  0xcb   : > { %339 = vst.msk [vmem:[#allocation3 + $0x22] sm:$0xff] %vm287_vm2, %v319_v35  ;;  %337 = vst.msk [vmem:[#allocation3 + $0xa] sm:$0xff] %vm287_vm2, %v315_v36 }
  0xce   : > { %v323_v37 = vpop.permute.xlu1 %322  ;;  %v321_v38 = vpop.permute.xlu0 %320  ;;  %v2333_v39 = vld [vmem:[#allocation3] sm:$0xff]  ;;  %v2349_v46 = vld [vmem:[#allocation3 + $0x18] sm:$0xff] }
  0xcf   : > { %341 = vst.msk [vmem:[#allocation3 + $0x3a] sm:$0xff] %vm287_vm2, %v323_v37  ;;  %340 = vst.msk [vmem:[#allocation3 + $0x32] sm:$0xff] %vm287_vm2, %v321_v38  ;;  %868 = vrot.lane.b32.xlu0 %v2333_v39, %s2080_s5 }
  0xd2   : > { %v327_v40 = vpop.permute.xlu1 %326  ;;  %v325_v41 = vpop.permute.xlu0 %324  ;;  %v2339_v42 = vld [vmem:[#allocation3 + $0x8] sm:$0xff]  ;;  %v2341_v43 = vld [vmem:[#allocation3 + $0x10] sm:$0xf]  ;;  %v2351_v47 = vld [vmem:[#allocation3 + $0x20] sm:$0xff] }
  0xd3   : > { %343 = vst.msk [vmem:[#allocation3 + $0x52] sm:$0xff] %vm287_vm2, %v327_v40  ;;  %342 = vst.msk [vmem:[#allocation3 + $0x4a] sm:$0xff] %vm287_vm2, %v325_v41  ;;  %870 = vrot.lane.b32.xlu1 %v2339_v42, %s2080_s5  ;;  %872 = vrot.lane.b32.xlu0 %v2341_v43, %s2080_s5  ;;  %v2364_v51 = vld [vmem:[#allocation3 + $0x28] sm:$0xf] }
  0xd6   : > { %v266_v44 = vpop.permute.xlu1 %265  ;;  %v264_v45 = vpop.permute.xlu0 %263  ;;  %v2382_v55 = vld [vmem:[#allocation3 + $0x30] sm:$0xff]  ;;  %v2388_v56 = vld [vmem:[#allocation3 + $0x38] sm:$0xff]  ;;  %v2402_v57 = vld [vmem:[#allocation3 + $0x40] sm:$0xf] }
  0xd7   : > { %289 = vst.msk [vmem:[#allocation2 + $0xa] sm:$0xff] %vm287_vm2, %v266_v44  ;;  %288 = vst.msk [vmem:[#allocation2 + $0x2] sm:$0xff] %vm287_vm2, %v264_v45  ;;  %874 = vrot.lane.b32.xlu1 %v2349_v46, %s2080_s5  ;;  %876 = vrot.lane.b32.xlu0 %v2351_v47, %s2080_s5 }
  0xda   : > { %v270_v48 = vpop.permute.xlu1 %269  ;;  %v268_v49 = vpop.permute.xlu0 %267  ;;  %v2416_v58 = vld [vmem:[#allocation3 + $0x48] sm:$0xff]  ;;  %v2422_v59 = vld [vmem:[#allocation3 + $0x50] sm:$0xff]  ;;  %v2446_v63 = vld [vmem:[#allocation3 + $0x58] sm:$0xf] }
  0xdb   : > { %291 = vst.msk [vmem:[#allocation2 + $0x22] sm:$0xff] %vm287_vm2, %v270_v48  ;;  %290 = vst.msk [vmem:[#allocation2 + $0x1a] sm:$0xff] %vm287_vm2, %v268_v49  ;;  %916 = vrot.lane.b32.xlu1 %v2333_v39, %s2081_s6  ;;  %918 = vrot.lane.b32.xlu0 %v2339_v42, %s2081_s6 }
  0xde   : > { %v274_v50 = vpop.permute.xlu1 %273  ;;  %v272_v52 = vpop.permute.xlu0 %271  ;;  %v2432_v60 = vld [vmem:[#allocation2] sm:$0xff]  ;;  %v2438_v61 = vld [vmem:[#allocation2 + $0x8] sm:$0xff]  ;;  %v2440_v62 = vld [vmem:[#allocation2 + $0x10] sm:$0xf] }
  0xdf   : > { %293 = vst.msk [vmem:[#allocation2 + $0x3a] sm:$0xff] %vm287_vm2, %v274_v50  ;;  %920 = vrot.lane.b32.xlu1 %v2341_v43, %s2081_s6  ;;  %878 = vrot.lane.b32.xlu0 %v2364_v51, %s2080_s5  ;;  %292 = vst.msk [vmem:[#allocation2 + $0x32] sm:$0xff] %vm287_vm2, %v272_v52  ;;  %v1367_v50 = vadd.f32 1e-06, %v2349_v46 }
  0xe1   : > { %1870 = vrcp.f32 %v1367_v50 }
  0xe2   : > { %v278_v53 = vpop.permute.xlu1 %277  ;;  %v276_v54 = vpop.permute.xlu0 %275  ;;  %v2460_v0 = vld [vmem:[#allocation2 + $0x20] sm:$0xff]  ;;  %v2462_v1 = vld [vmem:[#allocation2 + $0x18] sm:$0xff]  ;;  %v2480_v2 = vld [vmem:[#allocation2 + $0x28] sm:$0xf] }
  0xe3   : > { %295 = vst.msk [vmem:[#allocation2 + $0x52] sm:$0xff] %vm287_vm2, %v278_v53  ;;  %922 = vrot.lane.b32.xlu1 %v2349_v46, %s2081_s6  ;;  %924 = vrot.lane.b32.xlu0 %v2351_v47, %s2081_s6  ;;  %294 = vst.msk [vmem:[#allocation2 + $0x4a] sm:$0xff] %vm287_vm2, %v276_v54 }
  0xe6   : > { %v2502_v8 = vld [vmem:[#allocation2 + $0x38] sm:$0xff]  ;;  %v2504_v9 = vld [vmem:[#allocation2 + $0x30] sm:$0xff]  ;;  %v2525_v28 = vld [vmem:[#allocation2 + $0x40] sm:$0xf] }
  0xe7   : > { %964 = vrot.lane.b32.xlu1 %v2333_v39, %s2079_s20  ;;  %966 = vrot.lane.b32.xlu0 %v2339_v42, %s2079_s20 }
  0xeb   : > { %968 = vrot.lane.b32.xlu1 %v2341_v43, %s2079_s20  ;;  %880 = vrot.lane.b32.xlu0 %v2382_v55, %s2080_s5 }
  0xef   : > { %882 = vrot.lane.b32.xlu1 %v2388_v56, %s2080_s5  ;;  %926 = vrot.lane.b32.xlu0 %v2364_v51, %s2081_s6 }
  0xf3   : > { %970 = vrot.lane.b32.xlu1 %v2349_v46, %s2079_s20  ;;  %972 = vrot.lane.b32.xlu0 %v2351_v47, %s2079_s20 }
  0xf7   : > { %1012 = vrot.lane.b32.xlu1 %v2333_v39, %s2082_s14  ;;  %1014 = vrot.lane.b32.xlu0 %v2339_v42, %s2082_s14 }
  0xfb   : > { %1016 = vrot.lane.b32.xlu1 %v2341_v43, %s2082_s14  ;;  %884 = vrot.lane.b32.xlu0 %v2402_v57, %s2080_s5 }
  0xff   : > { %928 = vrot.lane.b32.xlu1 %v2382_v55, %s2081_s6  ;;  %930 = vrot.lane.b32.xlu0 %v2388_v56, %s2081_s6 }
 0x103   : > { %974 = vrot.lane.b32.xlu1 %v2364_v51, %s2079_s20  ;;  %1018 = vrot.lane.b32.xlu0 %v2349_v46, %s2082_s14 }
 0x107   : > { %1020 = vrot.lane.b32.xlu1 %v2351_v47, %s2082_s14  ;;  %886 = vrot.lane.b32.xlu0 %v2416_v58, %s2080_s5 }
 0x10b   : > { %888 = vrot.lane.b32.xlu1 %v2422_v59, %s2080_s5  ;;  %932 = vrot.lane.b32.xlu0 %v2402_v57, %s2081_s6 }
 0x10f   : > { %976 = vrot.lane.b32.xlu1 %v2382_v55, %s2079_s20  ;;  %978 = vrot.lane.b32.xlu0 %v2388_v56, %s2079_s20 }
 0x113   : > { %1022 = vrot.lane.b32.xlu1 %v2364_v51, %s2082_s14  ;;  %368 = vrot.lane.b32.xlu0 %v2432_v60, %s2080_s5 }
 0x117   : > { %370 = vrot.lane.b32.xlu1 %v2438_v61, %s2080_s5  ;;  %372 = vrot.lane.b32.xlu0 %v2440_v62, %s2080_s5 }
 0x11b   : > { %890 = vrot.lane.b32.xlu1 %v2446_v63, %s2080_s5  ;;  %934 = vrot.lane.b32.xlu0 %v2416_v58, %s2081_s6 }
 0x11f   : > { %936 = vrot.lane.b32.xlu1 %v2422_v59, %s2081_s6  ;;  %980 = vrot.lane.b32.xlu0 %v2402_v57, %s2079_s20 }
 0x123   : > { %1024 = vrot.lane.b32.xlu1 %v2382_v55, %s2082_s14  ;;  %1026 = vrot.lane.b32.xlu0 %v2388_v56, %s2082_s14 }
 0x127   : > { %376 = vrot.lane.b32.xlu0 %v2460_v0, %s2080_s5  ;;  %374 = vrot.lane.b32.xlu1 %v2462_v1, %s2080_s5 }
 0x12b   : > { %418 = vrot.lane.b32.xlu0 %v2438_v61, %s2081_s6  ;;  %416 = vrot.lane.b32.xlu1 %v2432_v60, %s2081_s6 }
 0x12f   : > { %938 = vrot.lane.b32.xlu0 %v2446_v63, %s2081_s6  ;;  %420 = vrot.lane.b32.xlu1 %v2440_v62, %s2081_s6 }
 0x133   : > { %984 = vrot.lane.b32.xlu0 %v2422_v59, %s2079_s20  ;;  %982 = vrot.lane.b32.xlu1 %v2416_v58, %s2079_s20 }
 0x137   : > { %378 = vrot.lane.b32.xlu0 %v2480_v2, %s2080_s5  ;;  %1028 = vrot.lane.b32.xlu1 %v2402_v57, %s2082_s14 }
 0x13b   : > { %424 = vrot.lane.b32.xlu0 %v2460_v0, %s2081_s6  ;;  %422 = vrot.lane.b32.xlu1 %v2462_v1, %s2081_s6 }
 0x13f   : > { %466 = vrot.lane.b32.xlu0 %v2438_v61, %s2079_s20  ;;  %464 = vrot.lane.b32.xlu1 %v2432_v60, %s2079_s20 }
 0x141   : > { %v869_v3 = vpop.permute.xlu0 %868 }
 0x142   : > { %v904_v44 = vadd.f32 %v869_v3, %v2333_v39 }
 0x143   : > { %986 = vrot.lane.b32.xlu0 %v2446_v63, %s2079_s20  ;;  %468 = vrot.lane.b32.xlu1 %v2440_v62, %s2079_s20 }
 0x145   : > { %v871_v4 = vpop.permute.xlu1 %870  ;;  %v873_v5 = vpop.permute.xlu0 %872 }
 0x146   : > { %v906_v26 = vadd.f32 %v873_v5, %v2341_v43  ;;  %v905_v45 = vadd.f32 %v871_v4, %v2339_v42 }
 0x147   : > { %1032 = vrot.lane.b32.xlu0 %v2422_v59, %s2082_s14  ;;  %1030 = vrot.lane.b32.xlu1 %v2416_v58, %s2082_s14 }
 0x149   : > { %v875_v6 = vpop.permute.xlu1 %874  ;;  %v877_v7 = vpop.permute.xlu0 %876 }
 0x14a   : > { %v907_v14 = vadd.f32 %v875_v6, %v2349_v46  ;;  %v908_v15 = vadd.f32 %v877_v7, %v2351_v47 }
 0x14b   : > { %382 = vrot.lane.b32.xlu0 %v2502_v8, %s2080_s5  ;;  %380 = vrot.lane.b32.xlu1 %v2504_v9, %s2080_s5 }
 0x14d   : > { %v917_v10 = vpop.permute.xlu1 %916  ;;  %v919_v11 = vpop.permute.xlu0 %918 }
 0x14e   : > { %v2554_v52 = vadd.f32 %v917_v10, %v904_v44  ;;  %v2556_v53 = vadd.f32 %v919_v11, %v905_v45 }
 0x14f   : > { %470 = vrot.lane.b32.xlu0 %v2462_v1, %s2079_s20  ;;  %426 = vrot.lane.b32.xlu1 %v2480_v2, %s2081_s6 }
 0x151   : > { %v921_v12 = vpop.permute.xlu1 %920  ;;  %v879_v13 = vpop.permute.xlu0 %878 }
 0x152   : > { %v2533_v31 = vadd.f32 %v921_v12, %v906_v26  ;;  %v909_v37 = vadd.f32 %v879_v13, %v2364_v51  ;;  %v2564_v12 = vld [vmem:[#allocation2 + $0x48] sm:$0xff]  ;;  %v1364_v13 = vadd.f32 1e-06, %v2333_v39  ;;  %v1368_v39 = vadd.f32 1e-06, %v2351_v47 }
 0x153   : > { %512 = vrot.lane.b32.xlu0 %v2432_v60, %s2082_s14  ;;  %472 = vrot.lane.b32.xlu1 %v2460_v0, %s2079_s20  ;;  %3489 = vst [vmem:[#allocation13_spill] sm:$0xff] %v2564_v12 }
 0x154   : > { %1872 = vrcp.f32 %v1364_v13 }
 0x155   : > { %v923_v16 = vpop.permute.xlu1 %922  ;;  %v925_v17 = vpop.permute.xlu0 %924  ;;  %1874 = vrcp.f32 %v1368_v39 }
 0x156   : > { %v955_v18 = vadd.f32 %v923_v16, %v907_v14  ;;  %v956_v19 = vadd.f32 %v925_v17, %v908_v15 }
 0x157   : > { %516 = vrot.lane.b32.xlu0 %v2440_v62, %s2082_s14  ;;  %514 = vrot.lane.b32.xlu1 %v2438_v61, %s2082_s14 }
 0x158   : > { %v1077_v20 = vrot.slane %v955_v18, 7  ;;  %v1121_v21 = vrot.slane %v955_v18, 1  ;;  %v1078_v22 = vrot.slane %v956_v19, 7  ;;  %v1122_v23 = vrot.slane %v956_v19, 1 }
 0x159   : > { %v965_v24 = vpop.permute.xlu1 %964  ;;  %v967_v25 = vpop.permute.xlu0 %966 }
 0x15a   : > { %v1107_v27 = vadd.f32 %v1077_v20, %v955_v18  ;;  %v1079_v29 = vsel %vm572_vm3, %v1077_v20, %v1078_v22  ;;  %v1123_v30 = vsel %vm617_vm4, %v1121_v21, %v1122_v23  ;;  %v1000_v11 = vadd.f32 %v965_v24, %v2554_v52  ;;  %v2581_v20 = vld [vmem:[#allocation2 + $0x50] sm:$0xff] }
 0x15b   : > { %384 = vrot.lane.b32.xlu0 %v2525_v28, %s2080_s5  ;;  %1034 = vrot.lane.b32.xlu1 %v2446_v63, %s2082_s14  ;;  %v1108_v32 = vadd.f32 %v1079_v29, %v956_v19  ;;  %v1001_v14 = vadd.f32 %v967_v25, %v2556_v53  ;;  %v1365_v21 = vadd.f32 1e-06, %v2339_v42 }
 0x15c   : > { %v2535_v33 = vadd.f32 %v1123_v30, %v1107_v27 }
 0x15d   : > { %v969_v34 = vpop.permute.xlu1 %968  ;;  %v881_v35 = vpop.permute.xlu0 %880  ;;  %1876 = vrcp.f32 %v1365_v21  ;;  %v1372_v21 = vadd.f32 1e-06, %v2402_v57 }
 0x15e   : > { %v1002_v36 = vadd.f32 %v969_v34, %v2533_v31  ;;  %v910_v25 = vadd.f32 %v881_v35, %v2382_v55 }
 0x15f   : > { %430 = vrot.lane.b32.xlu0 %v2502_v8, %s2081_s6  ;;  %428 = vrot.lane.b32.xlu1 %v2504_v9, %s2081_s6 }
 0x161   : > { %v883_v38 = vpop.permute.xlu1 %882  ;;  %v927_v40 = vpop.permute.xlu0 %926 }
 0x162   : > { %v2543_v41 = vadd.f32 %v927_v40, %v909_v37  ;;  %v1369_v40 = vadd.f32 1e-06, %v2364_v51  ;;  %v911_v44 = vadd.f32 %v883_v38, %v2388_v56 }
 0x163   : > { %518 = vrot.lane.b32.xlu0 %v2462_v1, %s2082_s14  ;;  %474 = vrot.lane.b32.xlu1 %v2480_v2, %s2079_s20 }
 0x164   : > { %v1080_v48 = vrot.slane %v2543_v41, 7  ;;  %v1124_v49 = vrot.slane %v2543_v41, 1 }
 0x165   : > { %v971_v54 = vpop.permute.xlu1 %970  ;;  %v973_v3 = vpop.permute.xlu0 %972 }
 0x166   : > { %v1081_v4 = vsel %vm572_vm3, %v1078_v22, %v1080_v48  ;;  %v1125_v5 = vsel %vm617_vm4, %v1122_v23, %v1124_v49  ;;  %v2560_v6 = vadd.f32 %v971_v54, %v955_v18  ;;  %v2562_v7 = vadd.f32 %v973_v3, %v956_v19 }
 0x167   : > { %v1109_v46 = vadd.f32 %v1081_v4, %v2543_v41  ;;  %v2568_v10 = vadd.f32 %v1125_v5, %v1108_v32  ;;  %520 = vrot.lane.b32.xlu1 %v2460_v0, %s2082_s14  ;;  %386 = vrot.lane.b32.xlu0 %v2564_v12, %s2080_s5  ;;  %v2585_v22 = vadd.f32 1e-06, %v2341_v43 }
 0x169   : > { %v2576_v15 = vadd.f32 %v1124_v49, %v1109_v46  ;;  %v1013_v16 = vpop.permute.xlu1 %1012  ;;  %v1015_v17 = vpop.permute.xlu0 %1014  ;;  %1878 = vrcp.f32 %v2585_v22  ;;  %v1116_v22 = vrot.slane %v2554_v52, 1 }
 0x16a   : > { %v1048_v18 = vadd.f32 %v1013_v16, %v1000_v11  ;;  %v2579_v19 = vadd.f32 %v1015_v17, %v1001_v14  ;;  %v2614_v14 = vld [vmem:[#allocation2 + $0x58] sm:$0xf]  ;;  %1880 = vrcp.f32 %v1369_v40  ;;  %v1117_v40 = vrot.slane %v2556_v53, 1 }
 0x16b   : > { %388 = vrot.lane.b32.xlu1 %v2581_v20, %s2080_s5  ;;  %432 = vrot.lane.b32.xlu0 %v2525_v28, %s2081_s6  ;;  %1882 = vrcp.f32 %v1372_v21 }
 0x16c   : > { %v1172_v23 = vrot.slane %v1048_v18, 7  ;;  %v1216_v47 = vrot.slane %v1048_v18, 1  ;;  %v1296_v24 = vrot.slane %v1048_v18, 2  ;;  %v1260_v26 = vrot.slane %v1048_v18, 6 }
 0x16d   : > { %v1173_v27 = vrot.slane %v2579_v19, 7  ;;  %v1217_v42 = vrot.slane %v2579_v19, 1  ;;  %v1017_v43 = vpop.permute.xlu1 %1016  ;;  %v2594_v29 = vpop.permute.xlu0 %884  ;;  %v1261_v32 = vrot.slane %v2579_v19, 6  ;;  %v1297_v34 = vrot.slane %v2579_v19, 2 }
 0x16e   : > { %v1204_v30 = vadd.f32 %v1172_v23, %v1048_v18  ;;  %v1050_v37 = vadd.f32 %v1017_v43, %v1002_v36  ;;  %v1072_v43 = vrot.slane %v2554_v52, 7 }
 0x16f   : > { %v1174_v35 = vsel %vm572_vm3, %v1172_v23, %v1173_v27  ;;  %v1218_v45 = vsel %vm617_vm4, %v1216_v47, %v1217_v42  ;;  %476 = vrot.lane.b32.xlu1 %v2504_v9, %s2079_s20  ;;  %478 = vrot.lane.b32.xlu0 %v2502_v8, %s2079_s20  ;;  %v1298_v50 = vsel %vm799_vm5, %v1296_v24, %v1297_v34 }
 0x170   : > { %v1205_v48 = vadd.f32 %v1174_v35, %v2579_v19  ;;  %v1248_v49 = vadd.f32 %v1218_v45, %v1204_v30  ;;  %v1175_v36 = vrot.slane %v1050_v37, 7  ;;  %v1219_v51 = vrot.slane %v1050_v37, 1 }
 0x171   : > { %v1262_v38 = vsel %vm762_vm6, %v1260_v26, %v1261_v32  ;;  %v1299_v54 = vrot.slane %v1050_v37, 2  ;;  %v929_v3 = vpop.permute.xlu1 %928  ;;  %v931_v4 = vpop.permute.xlu0 %930 }
 0x172   : > { %v1284_v5 = vadd.f32 %v1260_v26, %v1248_v49  ;;  %v1176_v13 = vsel %vm572_vm3, %v1173_v27, %v1175_v36  ;;  %v2610_v46 = vadd.f32 %v929_v3, %v910_v25  ;;  %v2612_v11 = vadd.f32 %v931_v4, %v911_v44  ;;  %v2634_v44 = vpop.eup %1870 }
 0x173   : > { %v1206_v16 = vadd.f32 %v1176_v13, %v1050_v37  ;;  %v1220_v17 = vsel %vm617_vm4, %v1217_v42, %v1219_v51  ;;  %v1300_v39 = vsel %vm799_vm5, %v1297_v34, %v1299_v54  ;;  %522 = vrot.lane.b32.xlu1 %v2480_v2, %s2082_s14  ;;  %390 = vrot.lane.b32.xlu0 %v2614_v14, %s2080_s5  ;;  %v2661_v4 = vadd.f32 1e-06, %v2388_v56 }
 0x174   : > { %v2622_v18 = vadd.f32 %v1298_v50, %v1284_v5  ;;  %v1249_v19 = vadd.f32 %v1220_v17, %v1205_v48  ;;  %v1082_v23 = vrot.slane %v2610_v46, 7  ;;  %v1126_v47 = vrot.slane %v2610_v46, 1  ;;  %v2645_v50 = vpop.eup %1872 }
 0x175   : > { %v1250_v24 = vadd.f32 %v1219_v51, %v1206_v16  ;;  %v1083_v25 = vrot.slane %v2612_v11, 7  ;;  %v1127_v26 = vrot.slane %v2612_v11, 1  ;;  %v975_v27 = vpop.permute.xlu1 %974  ;;  %v1019_v42 = vpop.permute.xlu0 %1018  ;;  %v1370_v51 = vadd.f32 1e-06, %v2382_v55 }
 0x176   : > { %v1285_v30 = vadd.f32 %v1262_v38, %v1249_v19  ;;  %v1110_v34 = vadd.f32 %v1082_v23, %v2610_v46  ;;  %v2632_v37 = vadd.f32 %v975_v27, %v2543_v41  ;;  %v1051_v49 = vadd.f32 %v1019_v42, %v2560_v6 }
 0x177   : > { %v1286_v35 = vadd.f32 %v1261_v32, %v1250_v24  ;;  %v1084_v45 = vsel %vm572_vm3, %v1082_v23, %v1083_v25  ;;  %v1128_v48 = vsel %vm617_vm4, %v1126_v47, %v1127_v26  ;;  %434 = vrot.lane.b32.xlu1 %v2564_v12, %s2081_s6  ;;  %436 = vrot.lane.b32.xlu0 %v2581_v20, %s2081_s6  ;;  %v1073_v16 = vrot.slane %v2556_v53, 7  ;;  %v2683_v24 = vpop.eup %1874 }
 0x178   : > { %v2648_v41 = vadd.f32 %v1300_v39, %v1285_v30  ;;  %v1111_v32 = vadd.f32 %v1084_v45, %v2612_v11  ;;  %v2651_v36 = vadd.f32 %v1128_v48, %v1110_v34  ;;  %v1177_v5 = vrot.slane %v1051_v49, 7  ;;  %3490 = vst [vmem:[#allocation14_spill] sm:$0xff] %v2683_v24  ;;  %v2702_v48 = vpop.eup %1876 }
 0x179   : > { %v2656_v6 = vadd.f32 %v1299_v54, %v1286_v35  ;;  %v1021_v38 = vpop.permute.xlu1 %1020  ;;  %v2658_v3 = vpop.permute.xlu0 %886  ;;  %v1104_v13 = vadd.f32 %v1072_v43, %v2554_v52  ;;  %v1075_v54 = vrot.slane %v2533_v31, 7  ;;  %v1119_v56 = vrot.slane %v2533_v31, 1 }
 0x17a   : > { %v2668_v55 = vadd.f32 %v1021_v38, %v2562_v7  ;;  %v912_v17 = vadd.f32 %v2594_v29, %v2402_v57  ;;  %v1221_v39 = vrot.slane %v1051_v49, 1  ;;  %v1263_v52 = vrot.slane %v1051_v49, 6 }
 0x17b   : > { %480 = vrot.lane.b32.xlu1 %v2525_v28, %s2079_s20  ;;  %524 = vrot.lane.b32.xlu0 %v2504_v9, %s2082_s14  ;;  %v1207_v27 = vadd.f32 %v1177_v5, %v1051_v49  ;;  %v1301_v42 = vrot.slane %v1051_v49, 2  ;;  %v1074_v30 = vsel %vm572_vm3, %v1072_v43, %v1073_v16  ;;  %v1076_v43 = vsel %vm572_vm3, %v1073_v16, %v1075_v54 }
 0x17c   : > { %v3468_v19 = vrot.slane %v2668_v55, 7  ;;  %v3466_v7 = vrot.slane %v2668_v55, 1  ;;  %v3465_v23 = vrot.slane %v2668_v55, 6  ;;  %v3467_v57 = vrot.slane %v2668_v55, 2 }
 0x17d   : > { %v2681_v47 = vpop.permute.xlu1 %888  ;;  %v933_v21 = vpop.permute.xlu0 %932  ;;  %v1120_v54 = vsel %vm617_vm4, %v1117_v40, %v1119_v56  ;;  %1884 = vrcp.f32 %v1370_v51 }
 0x17e   : > { %v2686_v29 = vadd.f32 %v933_v21, %v912_v17  ;;  %v1179_v34 = vsel %vm572_vm3, %v1177_v5, %v3468_v19  ;;  %v1223_v35 = vsel %vm617_vm4, %v1221_v39, %v3466_v7  ;;  %v2700_v45 = vsel %vm762_vm6, %v1263_v52, %v3465_v23 }
 0x17f   : > { %526 = vrot.lane.b32.xlu1 %v2502_v8, %s2082_s14  ;;  %v1208_v49 = vadd.f32 %v1179_v34, %v2668_v55  ;;  %v1251_v38 = vadd.f32 %v1223_v35, %v1207_v27  ;;  %v1303_v5 = vsel %vm799_vm5, %v1301_v42, %v3467_v57  ;;  %438 = vrot.lane.b32.xlu0 %v2614_v14, %s2081_s6  ;;  %v1375_v17 = vadd.f32 1e-06, %v2446_v63 }
 0x180   : > { %v1118_v39 = vsel %vm617_vm4, %v1116_v22, %v1117_v40  ;;  %v1085_v21 = vrot.slane %v2686_v29, 7  ;;  %v1129_v23 = vrot.slane %v2686_v29, 1  ;;  %v1105_v35 = vadd.f32 %v1074_v30, %v2556_v53 }
 0x181   : > { %v977_v7 = vpop.permute.xlu1 %976  ;;  %v979_v16 = vpop.permute.xlu0 %978  ;;  %v1287_v27 = vadd.f32 %v1263_v52, %v1251_v38  ;;  %v1106_v57 = vadd.f32 %v1076_v43, %v2533_v31  ;;  %v1373_v53 = vadd.f32 1e-06, %v2416_v58  ;;  %v1341_v38 = vmul.f32 2.0, %v2438_v61 }
 0x182   : > { %v2717_v34 = vadd.f32 %v977_v7, %v2610_v46  ;;  %v2720_v42 = vadd.f32 %v979_v16, %v2612_v11  ;;  %v1086_v22 = vsel %vm572_vm3, %v1083_v25, %v1085_v21  ;;  %v1130_v19 = vsel %vm617_vm4, %v1127_v26, %v1129_v23  ;;  %v2739_v31 = vpop.eup %1878 }
 0x183   : > { %482 = vrot.lane.b32.xlu1 %v2564_v12, %s2079_s20  ;;  %v1148_v46 = vadd.f32 %v1118_v39, %v1104_v13  ;;  %v2732_v40 = vadd.f32 %v1303_v5, %v1287_v27  ;;  %v1112_v52 = vadd.f32 %v1086_v22, %v2686_v29  ;;  %v2735_v7 = vadd.f32 %v1130_v19, %v1111_v32  ;;  %v2745_v30 = vpop.eup %1880 }
 0x184   : > { %484 = vrot.lane.b32.xlu0 %v2581_v20, %s2079_s20  ;;  %v1149_v11 = vadd.f32 %v1120_v54, %v1105_v35  ;;  %v1342_v13 = vmul.f32 2.0, %v2440_v62  ;;  %v1340_v19 = vmul.f32 2.0, %v2432_v60  ;;  %v2752_v5 = vpop.eup %1882  ;;  %1886 = vrcp.f32 %v2661_v4 }
 0x185   : > { %v1023_v25 = vpop.permute.xlu1 %1022  ;;  %v2742_v26 = vpop.permute.xlu0 %368  ;;  %v2747_v43 = vadd.f32 %v1129_v23, %v1112_v52  ;;  %3491 = vst [vmem:[#allocation15_spill] sm:$0xff] %v2752_v5  ;;  %v1150_v51 = vadd.f32 %v1119_v56, %v1106_v57  ;;  %v1374_v39 = vadd.f32 1e-06, %v2422_v59  ;;  %1888 = vrcp.f32 %v1375_v17 }
 0x186   : > { %v1053_v32 = vadd.f32 %v1023_v25, %v2632_v37  ;;  %v1424_v21 = vmul.f32 0.11111111, %v1148_v46  ;;  %v1425_v37 = vmul.f32 0.11111111, %v1149_v11  ;;  %1890 = vrcp.f32 %v1373_v53 }
 0x187   : > { %528 = vrot.lane.b32.xlu1 %v2525_v28, %s2082_s14  ;;  %v1352_v4 = vadd.f32 1e-06, %v1340_v19  ;;  %v1353_v56 = vadd.f32 1e-06, %v1341_v38  ;;  %v2764_v57 = vadd.f32 1e-06, %v1342_v13  ;;  %v913_v53 = vadd.f32 %v2658_v3, %v2416_v58 }
 0x188   : > { %486 = vrot.lane.b32.xlu0 %v2614_v14, %s2079_s20  ;;  %v1180_v23 = vrot.slane %v1053_v32, 7  ;;  %v1224_v16 = vrot.slane %v1053_v32, 1  ;;  %v1304_v54 = vrot.slane %v1053_v32, 2  ;;  %v1426_v22 = vmul.f32 0.11111111, %v1150_v51 }
 0x189   : > { %v2760_v27 = vpop.permute.xlu1 %370  ;;  %v2762_v35 = vpop.permute.xlu0 %372  ;;  %v3492_v17 = vrot.slane %v2668_v55, 7  ;;  %v3493_v52 = vrot.slane %v2668_v55, 1  ;;  %v3494_v25 = vrot.slane %v2668_v55, 2  ;;  %v1345_v38 = vmul.f32 2.0, %v2480_v2 }
 0x18a   : > { %1892 = vrcp.f32 %v1374_v39  ;;  %v1460_v51 = vadd.f32 1e-06, %v1424_v21  ;;  %v2795_v39 = vmul.f32 %v2702_v48, %v1353_v56  ;;  %v1429_v21 = vmul.f32 0.11111111, %v2576_v15  ;;  %v2807_v56 = vpop.eup %1884 }
 0x18b   : > { %v1181_v46 = vsel %vm572_vm3, %v3492_v17, %v1180_v23  ;;  %v1225_v11 = vsel %vm617_vm4, %v3493_v52, %v1224_v16  ;;  %v1305_v5 = vsel %vm799_vm5, %v3494_v25, %v1304_v54  ;;  %530 = vrot.lane.b32.xlu1 %v2564_v12, %s2082_s14  ;;  %v1461_v23 = vadd.f32 1e-06, %v1425_v37 }
 0x18c   : > { %v1209_v13 = vadd.f32 %v1181_v46, %v1053_v32  ;;  %v1252_v19 = vadd.f32 %v1225_v11, %v1208_v49  ;;  %532 = vrot.lane.b32.xlu0 %v2581_v20, %s2082_s14  ;;  %v1427_v17 = vmul.f32 0.11111111, %v2535_v33  ;;  %v1428_v12 = vmul.f32 0.11111111, %v2568_v10 }
 0x18d   : > { %v2783_v52 = vpop.permute.xlu1 %890  ;;  %v935_v25 = vpop.permute.xlu0 %934  ;;  %v1462_v49 = vadd.f32 1e-06, %v1426_v22  ;;  %v2792_v32 = vmul.f32 %v2645_v50, %v1352_v4  ;;  %v1343_v33 = vmul.f32 2.0, %v2462_v1  ;;  %v914_v10 = vadd.f32 %v2681_v47, %v2422_v59 }
 0x18e   : > { %v1253_v24 = vadd.f32 %v1224_v16, %v1209_v13  ;;  %v1288_v58 = vadd.f32 %v2700_v45, %v1252_v19  ;;  %v2787_v3 = vadd.f32 %v935_v25, %v913_v53  ;;  %v3495_v45 = vrot.slane %v2668_v55, 6 }
 0x18f   : > { %534 = vrot.lane.b32.xlu1 %v2614_v14, %s2082_s14  ;;  %1894 = vrcp.f32 %v1460_v51  ;;  %v1463_v22 = vadd.f32 1e-06, %v1427_v17  ;;  %v1344_v48 = vmul.f32 2.0, %v2460_v0  ;;  %v1464_v15 = vadd.f32 1e-06, %v1428_v12 }
 0x190   : > { %v1289_v37 = vadd.f32 %v3495_v45, %v1253_v24  ;;  %v2803_v16 = vadd.f32 %v1305_v5, %v1288_v58  ;;  %v1087_v50 = vrot.slane %v2787_v3, 7  ;;  %1896 = vrcp.f32 %v1461_v23 }
 0x191   : > { %v937_v4 = vpop.permute.xlu1 %936  ;;  %v981_v46 = vpop.permute.xlu0 %980  ;;  %1898 = vrcp.f32 %v1462_v49  ;;  %v2816_v47 = vadd.f32 1e-06, %v1345_v38  ;;  %v1348_v24 = vmul.f32 2.0, %v2525_v28  ;;  %v1465_v53 = vadd.f32 1e-06, %v1429_v21 }
 0x192   : > { %v2809_v11 = vadd.f32 %v1304_v54, %v1289_v37  ;;  %v2811_v59 = vadd.f32 %v937_v4, %v914_v10  ;;  %v2814_v55 = vadd.f32 %v981_v46, %v2686_v29  ;;  %v2819_v5 = vpop.eup %1886  ;;  %v1131_v13 = vrot.slane %v2787_v3, 1 }
 0x193   : > { %v2824_v54 = vpop.eup %1888  ;;  %1900 = vrcp.f32 %v1463_v22  ;;  %v1520_v51 = vmul.f32 0.04, %v2622_v18  ;;  %v1113_v29 = vadd.f32 %v1087_v50, %v2787_v3  ;;  %v2828_v17 = vadd.f32 1e-06, %v1343_v33 }
 0x194   : > { %v3475_v19 = vrot.slane %v2811_v59, 7  ;;  %v3474_v12 = vrot.slane %v2811_v59, 1  ;;  %3496 = vst [vmem:[#allocation16_spill] sm:$0xff] %v2824_v54  ;;  %1902 = vrcp.f32 %v1464_v15  ;;  %v2836_v58 = vadd.f32 1e-06, %v1344_v48  ;;  %v2838_v49 = vpop.eup %1890 }
 0x195   : > { %v1025_v38 = vpop.permute.xlu1 %1024  ;;  %v1027_v23 = vpop.permute.xlu0 %1026  ;;  %3497 = vst [vmem:[#allocation17_spill] sm:$0xff] %v2838_v49  ;;  %1904 = vrcp.f32 %v1465_v53  ;;  %v1346_v45 = vmul.f32 2.0, %v2504_v9  ;;  %v2851_v37 = vmul.f32 2.0, %v2502_v8  ;;  %v2853_v22 = vadd.f32 1e-06, %v1348_v24 }
 0x196   : > { %v1089_v28 = vsel %vm572_vm3, %v1087_v50, %v3475_v19  ;;  %v1133_v25 = vsel %vm617_vm4, %v1131_v13, %v3474_v12  ;;  %v1054_v33 = vadd.f32 %v1025_v38, %v2717_v34  ;;  %v2847_v10 = vadd.f32 %v1027_v23, %v2720_v42 }
 0x197   : > { %v2841_v18 = vadd.f32 %v1089_v28, %v2811_v59  ;;  %v2843_v21 = vadd.f32 %v1133_v25, %v1113_v29  ;;  %v1556_v50 = vadd.f32 1e-06, %v1520_v51  ;;  %v2859_v34 = vpop.eup %1892  ;;  %v1521_v24 = vmul.f32 0.04, %v2648_v41 }
 0x198   : > { %v1182_v4 = vrot.slane %v1054_v33, 7  ;;  %v1226_v46 = vrot.slane %v1054_v33, 1  ;;  %v1266_v48 = vrot.slane %v1054_v33, 6  ;;  %3498 = vst [vmem:[#allocation18_spill] sm:$0xff] %v2859_v34  ;;  %v1306_v42 = vrot.slane %v1054_v33, 2 }
 0x199   : > { %v2855_v15 = vpop.permute.xlu1 %374  ;;  %v2857_v13 = vpop.permute.xlu0 %376  ;;  %v3470_v53 = vrot.slane %v2847_v10, 7  ;;  %v3471_v9 = vrot.slane %v2847_v10, 1  ;;  %v3472_v8 = vrot.slane %v2847_v10, 6  ;;  %v404_v51 = vadd.f32 %v2742_v26, %v2432_v60 }
 0x19a   : > { %v1210_v29 = vadd.f32 %v1182_v4, %v1054_v33  ;;  %v3473_v38 = vrot.slane %v2847_v10, 2  ;;  %v405_v23 = vadd.f32 %v2760_v27, %v2438_v61  ;;  %v1522_v60 = vmul.f32 0.04, %v2656_v6 }
 0x19b   : > { %v1184_v28 = vsel %vm572_vm3, %v1182_v4, %v3470_v53  ;;  %v1228_v25 = vsel %vm617_vm4, %v1226_v46, %v3471_v9  ;;  %v2879_v41 = vsel %vm762_vm6, %v1266_v48, %v3472_v8  ;;  %1906 = vrcp.f32 %v1556_v50 }
 0x19c   : > { %v2883_v26 = vadd.f32 %v1184_v28, %v2847_v10  ;;  %v1254_v33 = vadd.f32 %v1228_v25, %v1210_v29  ;;  %v1308_v61 = vsel %vm799_vm5, %v1306_v42, %v3473_v38  ;;  %v2888_v53 = vpop.eup %1894  ;;  %v2894_v8 = vadd.f32 1e-06, %v1346_v45 }
 0x19d   : > { %v417_v27 = vpop.permute.xlu1 %416  ;;  %v419_v4 = vpop.permute.xlu0 %418  ;;  %v1557_v28 = vadd.f32 1e-06, %v1521_v24  ;;  %v1430_v29 = vmul.f32 0.11111111, %v2651_v36  ;;  %v406_v25 = vadd.f32 %v2762_v35, %v2440_v62  ;;  %v915_v36 = vadd.f32 %v2783_v52, %v2446_v63 }
 0x19e   : > { %v2890_v46 = vadd.f32 %v417_v27, %v404_v51  ;;  %v2892_v9 = vadd.f32 %v419_v4, %v405_v23  ;;  %v2896_v6 = vpop.eup %1896  ;;  %v1290_v42 = vadd.f32 %v1266_v48, %v1254_v33  ;;  %v1558_v23 = vadd.f32 1e-06, %v1522_v60 }
 0x19f   : > { %v2901_v38 = vpop.eup %1898  ;;  %v1523_v27 = vmul.f32 0.04, %v2732_v40  ;;  %v1466_v40 = vadd.f32 1e-06, %v1430_v29  ;;  %v1431_v49 = vmul.f32 0.11111111, %v2735_v7  ;;  %1908 = vrcp.f32 %v1557_v28 }
 0x1a0   : > { %v573_v12 = vrot.slane %v2890_v46, 7  ;;  %v618_v50 = vrot.slane %v2890_v46, 1  ;;  %v574_v51 = vrot.slane %v2892_v9, 7  ;;  %v619_v45 = vrot.slane %v2892_v9, 1  ;;  %v2912_v48 = vpop.eup %1900 }
 0x1a1   : > { %v2910_v24 = vadd.f32 %v1308_v61, %v1290_v42  ;;  %v421_v62 = vpop.permute.xlu1 %420  ;;  %v939_v35 = vpop.permute.xlu0 %938  ;;  %1910 = vrcp.f32 %v1558_v23 }
 0x1a2   : > { %v605_v33 = vadd.f32 %v573_v12, %v2890_v46  ;;  %v575_v4 = vsel %vm572_vm3, %v573_v12, %v574_v51  ;;  %v620_v19 = vsel %vm617_vm4, %v618_v50, %v619_v45  ;;  %v2917_v34 = vadd.f32 %v421_v62, %v406_v25  ;;  %v2919_v60 = vpop.eup %1902 }
 0x1a3   : > { %3499 = vst [vmem:[#allocation19_spill] sm:$0xff] %v2919_v60  ;;  %v606_v63 = vadd.f32 %v575_v4, %v2892_v9  ;;  %v2923_v52 = vadd.f32 %v939_v35, %v915_v36  ;;  %v2927_v12 = vpop.eup %1904  ;;  %v1559_v25 = vadd.f32 1e-06, %v1523_v27  ;;  %v1432_v4 = vmul.f32 0.11111111, %v2747_v43 }
 0x1a4   : > { %v650_v61 = vadd.f32 %v620_v19, %v605_v33  ;;  %v576_v42 = vrot.slane %v2917_v34, 7  ;;  %v621_v54 = vrot.slane %v2917_v34, 1  ;;  %3500 = vst [vmem:[#allocation20_spill] sm:$0xff] %v2927_v12  ;;  %v1467_v35 = vadd.f32 1e-06, %v1431_v49 }
 0x1a5   : > { %v1090_v50 = vrot.slane %v2923_v52, 7  ;;  %v1134_v29 = vrot.slane %v2923_v52, 1  ;;  %v983_v62 = vpop.permute.xlu1 %982  ;;  %v985_v7 = vpop.permute.xlu0 %984  ;;  %v3501_v27 = vrot.slane %v2811_v59, 7  ;;  %1912 = vrcp.f32 %v1466_v40 }
 0x1a6   : > { %v577_v36 = vsel %vm572_vm3, %v574_v51, %v576_v42  ;;  %v622_v19 = vsel %vm617_vm4, %v619_v45, %v621_v54  ;;  %v2935_v28 = vadd.f32 %v983_v62, %v2787_v3  ;;  %v3502_v43 = vrot.slane %v2811_v59, 1 }
 0x1a7   : > { %v607_v33 = vadd.f32 %v577_v36, %v2917_v34  ;;  %v651_v23 = vadd.f32 %v622_v19, %v606_v63  ;;  %v1091_v12 = vsel %vm572_vm3, %v3501_v27, %v1090_v50  ;;  %v2946_v45 = vadd.f32 %v985_v7, %v2811_v59 }
 0x1a8   : > { %v1115_v60 = vadd.f32 %v1091_v12, %v2923_v52  ;;  %v1135_v51 = vsel %vm617_vm4, %v3502_v43, %v1134_v29  ;;  %v1524_v3 = vmul.f32 0.04, %v2803_v16  ;;  %1914 = vrcp.f32 %v1559_v25  ;;  %v2960_v59 = vpop.eup %1906 }
 0x1a9   : > { %v652_v49 = vadd.f32 %v621_v54, %v607_v33  ;;  %v1413_v42 = vmul.f32 0.11111111, %v651_v23  ;;  %v2950_v63 = vadd.f32 %v1135_v51, %v2841_v18  ;;  %v1029_v62 = vpop.permute.xlu1 %1028  ;;  %v2952_v36 = vpop.permute.xlu0 %378  ;;  %v2958_v50 = vadd.f32 1e-06, %v2851_v37 }
 0x1aa   : > { %v2954_v40 = vadd.f32 %v1134_v29, %v1115_v60  ;;  %v1056_v12 = vadd.f32 %v1029_v62, %v2814_v55  ;;  %v1468_v7 = vadd.f32 1e-06, %v1432_v4  ;;  %1916 = vrcp.f32 %v1467_v35 }
 0x1ab   : > { %v1414_v16 = vmul.f32 0.11111111, %v652_v49  ;;  %v1437_v54 = vmul.f32 2.0, %v1413_v42  ;;  %v1525_v18 = vmul.f32 0.04, %v2809_v11  ;;  %v407_v60 = vadd.f32 %v2855_v15, %v2462_v1 }
 0x1ac   : > { %v1185_v19 = vrot.slane %v1056_v12, 7  ;;  %v1229_v33 = vrot.slane %v1056_v12, 1  ;;  %v1309_v23 = vrot.slane %v1056_v12, 2  ;;  %v1560_v27 = vadd.f32 1e-06, %v1524_v3 }
 0x1ad   : > { %v1438_v25 = vmul.f32 2.0, %v1414_v16  ;;  %v423_v55 = vpop.permute.xlu1 %422  ;;  %v425_v29 = vpop.permute.xlu0 %424  ;;  %v1449_v37 = vadd.f32 1e-06, %v1437_v54  ;;  %v408_v43 = vadd.f32 %v2857_v13, %v2460_v0  ;;  %v3503_v4 = vrot.slane %v2847_v10, 7 }
 0x1ae   : > { %v3504_v11 = vrot.slane %v2847_v10, 1  ;;  %v3505_v3 = vrot.slane %v2847_v10, 2  ;;  %v1433_v1 = vmul.f32 0.11111111, %v2843_v21  ;;  %v1526_v0 = vmul.f32 0.04, %v2910_v24 }
 0x1af   : > { %v1186_v35 = vsel %vm572_vm3, %v3503_v4, %v1185_v19  ;;  %v1450_v15 = vadd.f32 1e-06, %v1438_v25  ;;  %v2979_v13 = vadd.f32 %v423_v55, %v407_v60  ;;  %v2981_v16 = vadd.f32 %v425_v29, %v408_v43  ;;  %v2986_v19 = vpop.eup %1908 }
 0x1b0   : > { %v1230_v51 = vsel %vm617_vm4, %v3504_v11, %v1229_v33  ;;  %v1310_v49 = vsel %vm799_vm5, %v3505_v3, %v1309_v23  ;;  %v1212_v42 = vadd.f32 %v1186_v35, %v1056_v12  ;;  %v2984_v54 = vmul.f32 %v2896_v6, %v1449_v37  ;;  %v2996_v24 = vpop.eup %1910 }
 0x1b1   : > { %v1255_v62 = vadd.f32 %v1230_v51, %v2883_v26  ;;  %v1412_v4 = vmul.f32 0.11111111, %v650_v61  ;;  %v2989_v21 = vpop.permute.xlu1 %464  ;;  %v2991_v12 = vpop.permute.xlu0 %466  ;;  %v2994_v26 = vmul.f32 %v2901_v38, %v1450_v15  ;;  %v578_v60 = vrot.slane %v2979_v13, 7 }
 0x1b2   : > { %v1256_v11 = vadd.f32 %v1229_v33, %v1212_v42  ;;  %v623_v6 = vrot.slane %v2979_v13, 1  ;;  %v579_v25 = vrot.slane %v2981_v16, 7  ;;  %v624_v61 = vrot.slane %v2981_v16, 1  ;;  %v3011_v51 = vpop.eup %1912 }
 0x1b3   : > { %v1291_v3 = vadd.f32 %v2879_v41, %v1255_v62  ;;  %1918 = vrcp.f32 %v1468_v7  ;;  %v1561_v33 = vadd.f32 1e-06, %v1525_v18  ;;  %v3506_v41 = vrot.slane %v2847_v10, 6 }
 0x1b4   : > { %v1469_v37 = vadd.f32 1e-06, %v1433_v1  ;;  %v608_v38 = vadd.f32 %v578_v60, %v2979_v13  ;;  %v580_v43 = vsel %vm572_vm3, %v578_v60, %v579_v25  ;;  %v625_v35 = vsel %vm617_vm4, %v623_v6, %v624_v61 }
 0x1b5   : > { %v1292_v55 = vadd.f32 %v3506_v41, %v1256_v11  ;;  %v1335_v29 = vadd.f32 %v1310_v49, %v1291_v3  ;;  %v1562_v15 = vadd.f32 1e-06, %v1526_v0  ;;  %v3014_v18 = vadd.f32 %v580_v43, %v2981_v16  ;;  %v3016_v10 = vpop.permute.xlu1 %468  ;;  %v3018_v49 = vpop.permute.xlu0 %986 }
 0x1b6   : > { %v1436_v1 = vmul.f32 2.0, %v1412_v4  ;;  %1920 = vrcp.f32 %v1560_v27  ;;  %v653_v42 = vadd.f32 %v625_v35, %v608_v38  ;;  %v3022_v62 = vmul.f32 %v2739_v31, %v2764_v57  ;;  %v3028_v0 = vpop.eup %1914  ;;  %v3507_v27 = vld [vmem:[#allocation14_spill] sm:$0xff] }
 0x1b7   : > { %v1336_v7 = vadd.f32 %v1309_v23, %v1292_v55  ;;  %v3026_v11 = vmul.f32 %v2745_v30, %v2816_v47  ;;  %1922 = vrcp.f32 %v1561_v33  ;;  %v1434_v23 = vmul.f32 0.11111111, %v2950_v63  ;;  %v3039_v60 = vpop.eup %1916  ;;  %v3508_v30 = vld [vmem:[#allocation15_spill] sm:$0xff] }
 0x1b8   : > { %v3033_v3 = vmul.f32 %v2634_v44, %v2828_v17  ;;  %v3037_v4 = vmul.f32 %v3507_v27, %v2836_v58  ;;  %1924 = vrcp.f32 %v1469_v37  ;;  %v1415_v31 = vmul.f32 0.11111111, %v653_v42 }
 0x1b9   : > { %v3043_v57 = vmul.f32 %v3508_v30, %v2853_v22  ;;  %v1351_v47 = vmul.f32 2.0, %v2614_v14  ;;  %1926 = vrcp.f32 %v1562_v15  ;;  %v1031_v63 = vpop.permute.xlu1 %1030  ;;  %v1033_v6 = vpop.permute.xlu0 %1032  ;;  %v1448_v33 = vadd.f32 1e-06, %v1436_v1 }
 0x1ba   : > { %v3048_v44 = vmul.f32 %v2807_v56, %v2894_v8  ;;  %v3052_v17 = vmul.f32 %v2819_v5, %v2958_v50  ;;  %v1435_v58 = vmul.f32 0.11111111, %v2954_v40  ;;  %v1057_v41 = vadd.f32 %v1031_v63, %v2935_v28 }
 0x1bb   : > { %v3057_v22 = vadd.f32 %v1033_v6, %v2946_v45  ;;  %v1439_v14 = vmul.f32 2.0, %v1415_v31  ;;  %v1470_v55 = vadd.f32 1e-06, %v1434_v23  ;;  %v1527_v37 = vmul.f32 0.04, %v1335_v29 }
 0x1bc   : > { %v1528_v38 = vmul.f32 0.04, %v1336_v7  ;;  %v409_v43 = vadd.f32 %v2952_v36, %v2480_v2  ;;  %v1187_v56 = vrot.slane %v1057_v41, 7  ;;  %v1231_v8 = vrot.slane %v1057_v41, 1 }
 0x1bd   : > { %v1269_v35 = vrot.slane %v1057_v41, 6  ;;  %v1311_v15 = vrot.slane %v1057_v41, 2  ;;  %v3479_v5 = vrot.slane %v3057_v22, 7  ;;  %v3478_v40 = vrot.slane %v3057_v22, 1  ;;  %v381_v50 = vpop.permute.xlu1 %380  ;;  %v383_v1 = vpop.permute.xlu0 %382 }
 0x1be   : > { %v3476_v28 = vrot.slane %v3057_v22, 6  ;;  %v3477_v45 = vrot.slane %v3057_v22, 2  ;;  %v1471_v42 = vadd.f32 1e-06, %v1435_v58  ;;  %v1213_v29 = vadd.f32 %v1187_v56, %v1057_v41 }
 0x1bf   : > { %v1473_v7 = vmul.f32 %v2888_v53, %v1448_v33  ;;  %v1451_v23 = vadd.f32 1e-06, %v1439_v14  ;;  %v1189_v2 = vsel %vm572_vm3, %v1187_v56, %v3479_v5  ;;  %v1233_v36 = vsel %vm617_vm4, %v1231_v8, %v3478_v40  ;;  %v3509_v56 = vld [vmem:[#allocation13_spill] sm:$0xff] }
 0x1c0   : > { %v1313_v27 = vsel %vm799_vm5, %v1311_v15, %v3477_v45  ;;  %v3078_v31 = vsel %vm762_vm6, %v1269_v35, %v3476_v28  ;;  %v3080_v30 = vpop.eup %1918  ;;  %v1563_v53 = vadd.f32 1e-06, %v1527_v37  ;;  %v3083_v63 = vadd.f32 %v1189_v2, %v3057_v22 }
 0x1c1   : > { %v1257_v6 = vadd.f32 %v1233_v36, %v1213_v29  ;;  %v1479_v33 = vmul.f32 %v2912_v48, %v1451_v23  ;;  %1928 = vrcp.f32 %v1470_v55  ;;  %v1564_v58 = vadd.f32 1e-06, %v1528_v38  ;;  %v427_v41 = vpop.permute.xlu1 %426  ;;  %v471_v14 = vpop.permute.xlu0 %470 }
 0x1c2   : > { %v3087_v8 = vmul.f32 2.0, %v3509_v56  ;;  %v3090_v15 = vmul.f32 2.0, %v2581_v20  ;;  %1930 = vrcp.f32 %v1471_v42  ;;  %v3092_v45 = vadd.f32 %v427_v41, %v409_v43 }
 0x1c3   : > { %v1293_v28 = vadd.f32 %v1269_v35, %v1257_v6  ;;  %v3094_v37 = vadd.f32 1e-06, %v1351_v47  ;;  %v3096_v2 = vpop.eup %1920  ;;  %v500_v48 = vadd.f32 %v2989_v21, %v2890_v46  ;;  %v501_v55 = vadd.f32 %v2991_v12, %v2892_v9 }
 0x1c4   : > { %v3103_v38 = vadd.f32 %v1473_v7, %v2792_v32  ;;  %v3107_v20 = vadd.f32 %v2984_v54, %v2795_v39  ;;  %v3109_v35 = vpop.eup %1922  ;;  %1932 = vrcp.f32 %v1563_v53  ;;  %v581_v43 = vrot.slane %v3092_v45, 7 }
 0x1c5   : > { %3510 = vst [vmem:[#allocation14_spill] sm:$0xff] %v3094_v37  ;;  %v1337_v47 = vadd.f32 %v1313_v27, %v1293_v28  ;;  %v626_v42 = vrot.slane %v3092_v45, 1  ;;  %v3113_v29 = vpop.eup %1924  ;;  %1934 = vrcp.f32 %v1564_v58  ;;  %v502_v9 = vadd.f32 %v3016_v10, %v2917_v34  ;;  %v473_v46 = vpop.permute.xlu1 %472  ;;  %v1942_v28 = vld [vmem:[#allocation2 + $0x30] sm:$0xff] }
 0x1c6   : > { %3511 = vst [vmem:[#allocation15_spill] sm:$0xff] %v3113_v29  ;;  %v1011_v32 = vadd.f32 %v3018_v49, %v2923_v52  ;;  %v513_v39 = vpop.permute.xlu0 %512  ;;  %v3121_v54 = vadd.f32 %v2994_v26, %v3022_v62  ;;  %v3123_v21 = vpop.eup %1926  ;;  %v3125_v7 = vadd.f32 %v1942_v28, %v381_v50  ;;  %v582_v23 = vsel %vm572_vm3, %v579_v25, %v581_v43  ;;  %v1943_v52 = vld [vmem:[#allocation2 + $0x38] sm:$0xff] }
 0x1c7   : > { %v1529_v12 = vmul.f32 0.04, %v1337_v47  ;;  %v627_v34 = vsel %vm617_vm4, %v624_v61, %v626_v42  ;;  %v3133_v10 = vadd.f32 %v1943_v52, %v383_v1  ;;  %v610_v26 = vadd.f32 %v582_v23, %v3092_v45 }
 0x1c8   : > { %v654_v49 = vadd.f32 %v627_v34, %v3014_v18  ;;  %v3137_v62 = vadd.f32 %v513_v39, %v500_v48  ;;  %v3140_v50 = vadd.f32 %v471_v14, %v2979_v13  ;;  %v3143_v27 = vadd.f32 %v473_v46, %v2981_v16 }
 0x1c9   : > { %v1565_v36 = vadd.f32 1e-06, %v1529_v12  ;;  %v3146_v25 = vadd.f32 %v1479_v33, %v3033_v3  ;;  %v655_v61 = vadd.f32 %v626_v42, %v610_v26  ;;  %v515_v58 = vpop.permute.xlu1 %514 }
 0x1ca   : > { %v1416_v53 = vmul.f32 0.11111111, %v654_v49  ;;  %v674_v1 = vrot.slane %v3137_v62, 7  ;;  %v718_v6 = vrot.slane %v3137_v62, 1  ;;  %v517_v18 = vpop.permute.xlu0 %516  ;;  %v763_v41 = vrot.slane %v3137_v62, 6 }
 0x1cb   : > { %1936 = vrcp.f32 %v1565_v36  ;;  %v3152_v14 = vadd.f32 %v515_v58, %v501_v55  ;;  %v1417_v16 = vmul.f32 0.11111111, %v655_v61  ;;  %v550_v3 = vadd.f32 %v517_v18, %v502_v9  ;;  %v1944_v49 = vld [vmem:[#allocation2 + $0x40] sm:$0xf] }
 0x1cc   : > { %v706_v56 = vadd.f32 %v674_v1, %v3137_v62  ;;  %v3155_v33 = vmul.f32 2.0, %v1416_v53 }
 0x1cd   : > { %v675_v48 = vrot.slane %v3152_v14, 7  ;;  %v719_v47 = vrot.slane %v3152_v14, 1  ;;  %v764_v43 = vrot.slane %v3152_v14, 6  ;;  %v3480_v42 = vrot.slane %v3152_v14, 2  ;;  %v1035_v55 = vpop.permute.xlu1 %1034 }
 0x1ce   : > { %v1441_v46 = vmul.f32 2.0, %v1417_v16  ;;  %v677_v39 = vrot.slane %v550_v3, 7  ;;  %v721_v12 = vrot.slane %v550_v3, 1  ;;  %v803_v28 = vrot.slane %v550_v3, 2  ;;  %v385_v23 = vpop.permute.xlu0 %384  ;;  %v3161_v34 = vpop.eup %1928 }
 0x1cf   : > { %3512 = vst [vmem:[#allocation13_spill] sm:$0xff] %v3161_v34  ;;  %v676_v9 = vsel %vm572_vm3, %v674_v1, %v675_v48  ;;  %v720_v52 = vsel %vm617_vm4, %v718_v6, %v719_v47  ;;  %v1059_v26 = vadd.f32 %v1035_v55, %v1011_v32  ;;  %v3165_v36 = vadd.f32 %v1944_v49, %v385_v23  ;;  %v3167_v61 = vpop.eup %1930 }
 0x1d0   : > { %v3169_v53 = vadd.f32 1e-06, %v1441_v46  ;;  %v707_v58 = vadd.f32 %v676_v9, %v3152_v14  ;;  %v678_v18 = vsel %vm572_vm3, %v675_v48, %v677_v39  ;;  %v722_v16 = vsel %vm617_vm4, %v719_v47, %v721_v12 }
 0x1d1   : > { %v708_v13 = vadd.f32 %v678_v18, %v550_v3  ;;  %v3177_v1 = vsel %vm799_vm5, %v3480_v42, %v803_v28  ;;  %v1190_v32 = vrot.slane %v1059_v26, 7  ;;  %v1234_v6 = vrot.slane %v1059_v26, 1  ;;  %v3179_v55 = vpop.eup %1932  ;;  %v429_v46 = vpop.permute.xlu1 %428 }
 0x1d2   : > { %v751_v23 = vadd.f32 %v722_v16, %v707_v58  ;;  %v1314_v49 = vrot.slane %v1059_v26, 2  ;;  %v431_v40 = vpop.permute.xlu0 %430  ;;  %v750_v5 = vadd.f32 %v720_v52, %v706_v56  ;;  %v765_v9 = vsel %vm762_vm6, %v763_v41, %v764_v43  ;;  %v3182_v48 = vpop.eup %1934 }
 0x1d3   : > { %v752_v47 = vadd.f32 %v721_v12, %v708_v13  ;;  %v3513_v3 = vrot.slane %v3057_v22, 7  ;;  %v3514_v18 = vrot.slane %v3057_v22, 1  ;;  %v3191_v37 = vadd.f32 %v429_v46, %v3125_v7 }
 0x1d4   : > { %v3515_v56 = vrot.slane %v3057_v22, 2  ;;  %v3198_v13 = vadd.f32 %v431_v40, %v3133_v10  ;;  %v787_v34 = vadd.f32 %v763_v41, %v750_v5  ;;  %v3517_v5 = vrot.slane %v3057_v22, 6 }
 0x1d5   : > { %v1191_v39 = vsel %vm572_vm3, %v3513_v3, %v1190_v32  ;;  %v1235_v42 = vsel %vm617_vm4, %v3514_v18, %v1234_v6  ;;  %v789_v12 = vadd.f32 %v764_v43, %v752_v47  ;;  %v583_v32 = vrot.slane %v3191_v37, 7 }
 0x1d6   : > { %v1215_v58 = vadd.f32 %v1191_v39, %v1059_v26  ;;  %v1258_v16 = vadd.f32 %v1235_v42, %v3083_v63  ;;  %v1315_v52 = vsel %vm799_vm5, %v3515_v56, %v1314_v49  ;;  %v628_v3 = vrot.slane %v3191_v37, 1  ;;  %v475_v42 = vpop.permute.xlu1 %474  ;;  %v519_v46 = vpop.permute.xlu0 %518 }
 0x1d7   : > { %v584_v26 = vrot.slane %v3198_v13, 7  ;;  %v629_v63 = vrot.slane %v3198_v13, 1  ;;  %v834_v39 = vadd.f32 %v803_v28, %v789_v12  ;;  %v611_v56 = vadd.f32 %v583_v32, %v3191_v37 }
 0x1d8   : > { %v1259_v18 = vadd.f32 %v1234_v6, %v1215_v58  ;;  %v1294_v7 = vadd.f32 %v3078_v31, %v1258_v16  ;;  %v3207_v40 = vadd.f32 %v475_v42, %v3092_v45  ;;  %v3210_v10 = vadd.f32 %v519_v46, %v3140_v50  ;;  %v3212_v43 = vpop.eup %1936 }
 0x1d9   : > { %3516 = vst [vmem:[#allocation21_spill] sm:$0xff] %v3212_v43  ;;  %v585_v6 = vsel %vm572_vm3, %v583_v32, %v584_v26  ;;  %v630_v47 = vsel %vm617_vm4, %v628_v3, %v629_v63  ;;  %v1510_v58 = vmul.f32 0.04, %v834_v39 }
 0x1da   : > { %v1295_v31 = vadd.f32 %v3517_v5, %v1259_v18  ;;  %v1338_v41 = vadd.f32 %v1315_v52, %v1294_v7  ;;  %v612_v28 = vadd.f32 %v585_v6, %v3198_v13  ;;  %v656_v16 = vadd.f32 %v630_v47, %v611_v56  ;;  %v521_v43 = vpop.permute.xlu1 %520  ;;  %v387_v22 = vpop.permute.xlu0 %386 }
 0x1db   : > { %v679_v45 = vrot.slane %v3210_v10, 7  ;;  %v723_v50 = vrot.slane %v3210_v10, 1  ;;  %v766_v46 = vrot.slane %v3210_v10, 6  ;;  %v1534_v18 = vmul.f32 2.0, %v1510_v58 }
 0x1dc   : > { %v1339_v12 = vadd.f32 %v1314_v49, %v1295_v31  ;;  %v1530_v42 = vmul.f32 0.04, %v1338_v41  ;;  %v3222_v52 = vmul.f32 0.11111111, %v656_v16  ;;  %v805_v3 = vrot.slane %v3210_v10, 2  ;;  %v1945_v49 = vld [vmem:[#allocation2 + $0x48] sm:$0xff] }
 0x1dd   : > { %v709_v32 = vadd.f32 %v679_v45, %v3210_v10  ;;  %v3227_v56 = vadd.f32 %v521_v43, %v3143_v27  ;;  %v3229_v5 = vadd.f32 %v1945_v49, %v387_v22  ;;  %v1546_v31 = vadd.f32 1e-06, %v1534_v18 }
 0x1de   : > { %v1531_v7 = vmul.f32 0.04, %v1339_v12  ;;  %v1566_v39 = vadd.f32 1e-06, %v1530_v42  ;;  %v788_v41 = vadd.f32 %v765_v9, %v751_v23  ;;  %v3518_v6 = vrot.slane %v3152_v14, 2  ;;  %v389_v43 = vpop.permute.xlu1 %388  ;;  %v433_v12 = vpop.permute.xlu0 %432  ;;  %v1946_v9 = vld [vmem:[#allocation2 + $0x50] sm:$0xff] }
 0x1df   : > { %v3519_v47 = vrot.slane %v3137_v62, 2  ;;  %v1452_v16 = vadd.f32 1e-06, %v3155_v33  ;;  %v680_v10 = vrot.slane %v3227_v56, 7  ;;  %v724_v27 = vrot.slane %v3227_v56, 1 }
 0x1e0   : > { %v1567_v29 = vadd.f32 1e-06, %v1531_v7  ;;  %1938 = vrcp.f32 %v1566_v39  ;;  %v3481_v42 = vrot.slane %v3227_v56, 6  ;;  %v806_v23 = vrot.slane %v3227_v56, 2 }
 0x1e1   : > { %v802_v58 = vsel %vm799_vm5, %v3519_v47, %v3518_v6  ;;  %v3241_v14 = vadd.f32 %v1946_v9, %v389_v43  ;;  %v3244_v62 = vadd.f32 %v433_v12, %v3165_v36  ;;  %v681_v33 = vsel %vm572_vm3, %v679_v45, %v680_v10 }
 0x1e2   : > { %1940 = vrcp.f32 %v1567_v29  ;;  %v725_v22 = vsel %vm617_vm4, %v723_v50, %v724_v27  ;;  %v832_v18 = vadd.f32 %v802_v58, %v787_v34  ;;  %v710_v7 = vadd.f32 %v681_v33, %v3227_v56  ;;  %v477_v47 = vpop.permute.xlu1 %476  ;;  %v479_v43 = vpop.permute.xlu0 %478 }
 0x1e3   : > { %v586_v39 = vrot.slane %v3244_v62, 7  ;;  %v631_v49 = vrot.slane %v3244_v62, 1  ;;  %v833_v6 = vadd.f32 %v3177_v1, %v788_v41  ;;  %v1573_v36 = vmul.f32 %v2996_v24, %v1546_v31 }
 0x1e4   : > { %v1508_v9 = vmul.f32 0.04, %v832_v18  ;;  %v753_v12 = vadd.f32 %v725_v22, %v709_v32  ;;  %v3256_v29 = vsel %vm762_vm6, %v766_v46, %v3481_v42  ;;  %v506_v50 = vadd.f32 %v477_v47, %v3191_v37  ;;  %v3520_v18 = vld [vmem:[#allocation19_spill] sm:$0xff] }
 0x1e5   : > { %v587_v34 = vsel %vm572_vm3, %v584_v26, %v586_v39  ;;  %v632_v45 = vsel %vm617_vm4, %v629_v63, %v631_v49  ;;  %v3262_v58 = vadd.f32 %v479_v43, %v3198_v13  ;;  %v1509_v33 = vmul.f32 0.04, %v833_v6 }
 0x1e6   : > { %v613_v1 = vadd.f32 %v587_v34, %v3244_v62  ;;  %v657_v41 = vadd.f32 %v632_v45, %v612_v28  ;;  %v1532_v24 = vmul.f32 2.0, %v1508_v9  ;;  %v1594_v32 = vadd.f32 %v1573_v36, %v3121_v54  ;;  %v523_v47 = vpop.permute.xlu1 %522  ;;  %v391_v13 = vpop.permute.xlu0 %390  ;;  %v1947_v28 = vld [vmem:[#allocation2 + $0x58] sm:$0xf] }
 0x1e7   : > { %v790_v31 = vadd.f32 %v766_v46, %v753_v12  ;;  %v807_v22 = vsel %vm799_vm5, %v805_v3, %v806_v23  ;;  %v1481_v42 = vmul.f32 %v3520_v18, %v1452_v16  ;;  %v1533_v63 = vmul.f32 2.0, %v1509_v33 }
 0x1e8   : > { %v658_v26 = vadd.f32 %v631_v49, %v613_v1  ;;  %v3268_v39 = vmul.f32 0.11111111, %v657_v41  ;;  %v1544_v37 = vadd.f32 1e-06, %v1532_v24  ;;  %v1619_v43 = vrot.slane %v1594_v32, 2  ;;  %v3521_v24 = vld [vmem:[#allocation20_spill] sm:$0xff] }
 0x1e9   : > { %v553_v34 = vadd.f32 %v523_v47, %v3207_v40  ;;  %v3271_v6 = vadd.f32 %v1947_v28, %v391_v13  ;;  %v835_v9 = vadd.f32 %v807_v22, %v790_v31  ;;  %v1545_v46 = vadd.f32 1e-06, %v1533_v63 }
 0x1ea   : > { %v1420_v54 = vmul.f32 0.11111111, %v658_v26  ;;  %v1569_v3 = vmul.f32 %v2960_v59, %v1544_v37  ;;  %v3275_v16 = vadd.f32 %v1481_v42, %v3037_v4  ;;  %v435_v33 = vpop.permute.xlu1 %434  ;;  %v1483_v32 = vmul.f32 %v3521_v24, %v3169_v53  ;;  %v437_v18 = vpop.permute.xlu0 %436 }
 0x1eb   : > { %v682_v49 = vrot.slane %v553_v34, 7  ;;  %v726_v36 = vrot.slane %v553_v34, 1  ;;  %v808_v12 = vrot.slane %v553_v34, 2  ;;  %v1511_v45 = vmul.f32 0.04, %v835_v9 }
 0x1ec   : > { %v1444_v1 = vmul.f32 2.0, %v1420_v54  ;;  %v1571_v41 = vmul.f32 %v2986_v19, %v1545_v46  ;;  %v1592_v40 = vadd.f32 %v1569_v3, %v3103_v38  ;;  %v461_v22 = vadd.f32 %v435_v33, %v3229_v5 }
 0x1ed   : > { %v3281_v31 = vpop.eup %1938  ;;  %v683_v59 = vsel %vm572_vm3, %v680_v10, %v682_v49  ;;  %v727_v4 = vsel %vm617_vm4, %v724_v27, %v726_v36  ;;  %v809_v42 = vsel %vm799_vm5, %v806_v23, %v808_v12  ;;  %v462_v10 = vadd.f32 %v437_v18, %v3241_v14 }
 0x1ee   : > { %v3287_v26 = vadd.f32 1e-06, %v1444_v1  ;;  %v1593_v19 = vadd.f32 %v1571_v41, %v3107_v20  ;;  %v1616_v38 = vrot.slane %v1592_v40, 2  ;;  %v711_v63 = vadd.f32 %v683_v59, %v553_v34  ;;  %v481_v9 = vpop.permute.xlu1 %480  ;;  %v525_v34 = vpop.permute.xlu0 %524 }
 0x1ef   : > { %v3290_v37 = vpop.eup %1940  ;;  %v754_v53 = vadd.f32 %v727_v4, %v710_v7  ;;  %v588_v47 = vrot.slane %v461_v22, 7  ;;  %v633_v13 = vrot.slane %v461_v22, 1  ;;  %v1535_v23 = vmul.f32 2.0, %v1511_v45 }
 0x1f0   : > { %v1617_v28 = vrot.slane %v1593_v19, 2  ;;  %v755_v27 = vadd.f32 %v726_v36, %v711_v63  ;;  %v3294_v5 = vadd.f32 %v1483_v32, %v3026_v11  ;;  %v589_v46 = vrot.slane %v462_v10, 7 }
 0x1f1   : > { %v614_v54 = vadd.f32 %v588_v47, %v461_v22  ;;  %v634_v3 = vrot.slane %v462_v10, 1  ;;  %v508_v20 = vadd.f32 %v481_v9, %v3244_v62  ;;  %v3522_v1 = vrot.slane %v3227_v56, 6 }
 0x1f2   : > { %v1618_v49 = vsel %vm799_vm5, %v1616_v38, %v1617_v28  ;;  %v1620_v7 = vsel %vm799_vm5, %v1617_v28, %v1619_v43  ;;  %v3301_v41 = vadd.f32 %v525_v34, %v506_v50  ;;  %v590_v11 = vsel %vm572_vm3, %v588_v47, %v589_v46  ;;  %v527_v56 = vpop.permute.xlu1 %526  ;;  %v439_v18 = vpop.permute.xlu0 %438 }
 0x1f3   : > { %v792_v14 = vadd.f32 %v3522_v1, %v755_v27  ;;  %1636 = vrot.lane.b32.xlu0 %v1618_v49, %s2082_s14  ;;  %1638 = vrot.lane.b32.xlu1 %v1620_v7, %s2082_s14  ;;  %v635_v36 = vsel %vm617_vm4, %v633_v13, %v634_v3  ;;  %v791_v62 = vadd.f32 %v3256_v29, %v754_v53  ;;  %v1547_v45 = vadd.f32 1e-06, %v1535_v23 }
 0x1f4   : > { %v615_v33 = vadd.f32 %v590_v11, %v462_v10  ;;  %v659_v24 = vadd.f32 %v635_v36, %v614_v54  ;;  %v684_v43 = vrot.slane %v3301_v41, 7  ;;  %v728_v50 = vrot.slane %v3301_v41, 1 }
 0x1f5   : > { %v837_v40 = vadd.f32 %v808_v12, %v792_v14  ;;  %v769_v32 = vrot.slane %v3301_v41, 6  ;;  %v810_v59 = vrot.slane %v3301_v41, 2  ;;  %v3313_v4 = vadd.f32 %v527_v56, %v3262_v58 }
 0x1f6   : > { %v3315_v38 = vmul.f32 0.11111111, %v659_v24  ;;  %v712_v29 = vadd.f32 %v684_v43, %v3301_v41  ;;  %v463_v12 = vadd.f32 %v439_v18, %v3271_v6  ;;  %v483_v9 = vpop.permute.xlu1 %482  ;;  %v836_v23 = vadd.f32 %v809_v42, %v791_v62  ;;  %v485_v7 = vpop.permute.xlu0 %484 }
 0x1f7   : > { %v1513_v19 = vmul.f32 0.04, %v837_v40  ;;  %v685_v63 = vrot.slane %v3313_v4, 7  ;;  %v729_v53 = vrot.slane %v3313_v4, 1  ;;  %v770_v47 = vrot.slane %v3313_v4, 6 }
 0x1f8   : > { %v811_v13 = vrot.slane %v3313_v4, 2  ;;  %v591_v27 = vrot.slane %v463_v12, 7  ;;  %v636_v58 = vrot.slane %v463_v12, 1  ;;  %v509_v49 = vadd.f32 %v483_v9, %v461_v22 }
 0x1f9   : > { %v1537_v28 = vmul.f32 2.0, %v1513_v19  ;;  %v686_v54 = vsel %vm572_vm3, %v684_v43, %v685_v63  ;;  %v730_v34 = vsel %vm617_vm4, %v728_v50, %v729_v53  ;;  %v1575_v6 = vmul.f32 %v3028_v0, %v1547_v45 }
 0x1fa   : > { %v713_v14 = vadd.f32 %v686_v54, %v3313_v4  ;;  %v592_v41 = vsel %vm572_vm3, %v589_v46, %v591_v27  ;;  %v637_v11 = vsel %vm617_vm4, %v634_v3, %v636_v58  ;;  %v510_v24 = vadd.f32 %v485_v7, %v462_v10  ;;  %v529_v42 = vpop.permute.xlu1 %528  ;;  %v487_v3 = vpop.permute.xlu0 %486 }
 0x1fb   : > { %v1549_v1 = vadd.f32 1e-06, %v1537_v28  ;;  %v616_v36 = vadd.f32 %v592_v41, %v463_v12  ;;  %v660_v40 = vadd.f32 %v637_v11, %v615_v33  ;;  %v1512_v56 = vmul.f32 0.04, %v836_v23 }
 0x1fc   : > { %v3330_v62 = vadd.f32 %v1575_v6, %v3146_v25  ;;  %v756_v43 = vadd.f32 %v730_v34, %v712_v29  ;;  %v771_v0 = vsel %vm762_vm6, %v769_v32, %v770_v47  ;;  %v556_v46 = vadd.f32 %v529_v42, %v508_v20 }
 0x1fd   : > { %v1579_v22 = vmul.f32 %v3109_v35, %v1549_v1  ;;  %v661_v45 = vadd.f32 %v636_v58, %v616_v36  ;;  %v3336_v50 = vmul.f32 0.11111111, %v660_v40  ;;  %v1536_v18 = vmul.f32 2.0, %v1512_v56 }
 0x1fe   : > { %v511_v33 = vadd.f32 %v487_v3, %v463_v12  ;;  %v1621_v10 = vrot.slane %v3330_v62, 2  ;;  %v793_v25 = vadd.f32 %v769_v32, %v756_v43  ;;  %v687_v27 = vrot.slane %v556_v46, 7  ;;  %v531_v9 = vpop.permute.xlu1 %530 }
 0x1ff   : > { %v1597_v19 = vadd.f32 %v1579_v22, %v3294_v5  ;;  %v1423_v28 = vmul.f32 0.11111111, %v661_v45  ;;  %v731_v35 = vrot.slane %v556_v46, 1  ;;  %v813_v29 = vrot.slane %v556_v46, 2  ;;  %v533_v5 = vpop.permute.xlu0 %532 }
 0x200   : > { %v1548_v23 = vadd.f32 1e-06, %v1536_v18  ;;  %v812_v58 = vsel %vm799_vm5, %v810_v59, %v811_v13  ;;  %v1442_v34 = vmul.f32 2.0, %v3222_v52  ;;  %v688_v7 = vsel %vm572_vm3, %v685_v63, %v687_v27 }
 0x201   : > { %v1624_v54 = vrot.slane %v1597_v19, 2  ;;  %v1447_v20 = vmul.f32 2.0, %v1423_v28  ;;  %v732_v12 = vsel %vm617_vm4, %v729_v53, %v731_v35  ;;  %v814_v6 = vsel %vm799_vm5, %v811_v13, %v813_v29 }
 0x202   : > { %v714_v32 = vadd.f32 %v688_v7, %v556_v46  ;;  %v757_v1 = vadd.f32 %v732_v12, %v713_v14  ;;  %v3345_v41 = vadd.f32 %v531_v9, %v509_v49  ;;  %v3347_v11 = vadd.f32 %v533_v5, %v510_v24  ;;  %v535_v42 = vpop.permute.xlu1 %534 }
 0x203   : > { %v3349_v36 = vadd.f32 1e-06, %v1447_v20  ;;  %v1577_v59 = vmul.f32 %v3096_v2, %v1548_v23  ;;  %v838_v40 = vadd.f32 %v812_v58, %v793_v25  ;;  %v1443_v52 = vmul.f32 2.0, %v3268_v39 }
 0x204   : > { %v758_v56 = vadd.f32 %v731_v35, %v714_v32  ;;  %v689_v63 = vrot.slane %v3345_v41, 7  ;;  %v733_v53 = vrot.slane %v3345_v41, 1  ;;  %v772_v13 = vrot.slane %v3345_v41, 6 }
 0x205   : > { %v815_v49 = vrot.slane %v3345_v41, 2  ;;  %v690_v14 = vrot.slane %v3347_v11, 7  ;;  %v734_v24 = vrot.slane %v3347_v11, 1  ;;  %v773_v62 = vrot.slane %v3347_v11, 6 }
 0x206   : > { %v795_v2 = vadd.f32 %v770_v47, %v758_v56  ;;  %v715_v39 = vadd.f32 %v689_v63, %v3345_v41  ;;  %v816_v22 = vrot.slane %v3347_v11, 2  ;;  %v1596_v43 = vadd.f32 %v1577_v59, %v3275_v16 }
 0x207   : > { %v691_v45 = vsel %vm572_vm3, %v689_v63, %v690_v14  ;;  %v735_v46 = vsel %vm617_vm4, %v733_v53, %v734_v24  ;;  %v559_v3 = vadd.f32 %v535_v42, %v511_v33  ;;  %v794_v18 = vadd.f32 %v771_v0, %v757_v1 }
 0x208   : > { %v840_v19 = vadd.f32 %v813_v29, %v795_v2  ;;  %v716_v25 = vadd.f32 %v691_v45, %v3347_v11  ;;  %v1622_v28 = vrot.slane %v1596_v43, 2  ;;  %v1454_v27 = vadd.f32 1e-06, %v1442_v34 }
 0x209   : > { %v692_v35 = vrot.slane %v559_v3, 7  ;;  %v736_v4 = vrot.slane %v559_v3, 1  ;;  %v818_v47 = vrot.slane %v559_v3, 2  ;;  %v839_v9 = vadd.f32 %v814_v6, %v794_v18 }
 0x20a   : > { %v1516_v23 = vmul.f32 0.04, %v840_v19  ;;  %v1623_v58 = vsel %vm799_vm5, %v1621_v10, %v1622_v28  ;;  %v1625_v16 = vsel %vm799_vm5, %v1622_v28, %v1624_v54  ;;  %v1455_v20 = vadd.f32 1e-06, %v1443_v52 }
 0x20b   : > { %1640 = vrot.lane.b32.xlu0 %v1623_v58, %s2082_s14  ;;  %1642 = vrot.lane.b32.xlu1 %v1625_v16, %s2082_s14  ;;  %v693_v0 = vsel %vm572_vm3, %v690_v14, %v692_v35  ;;  %v737_v33 = vsel %vm617_vm4, %v734_v24, %v736_v4  ;;  %v819_v29 = vsel %vm799_vm5, %v816_v22, %v818_v47  ;;  %v1514_v34 = vmul.f32 0.04, %v838_v40  ;;  %v3523_v35 = vld [vmem:[#allocation15_spill] sm:$0xff]  ;;  %v3525_v58 = vld [vmem:[#allocation14_spill] sm:$0xff]  ;;  %v3526_v16 = vld [vmem:[#allocation16_spill] sm:$0xff] }
 0x20c   : > { %v1540_v7 = vmul.f32 2.0, %v1516_v23  ;;  %v717_v12 = vadd.f32 %v693_v0, %v559_v3  ;;  %v760_v6 = vadd.f32 %v737_v33, %v716_v25  ;;  %v1485_v5 = vmul.f32 %v3011_v51, %v1454_v27  ;;  %v3527_v33 = vld [vmem:[#allocation17_spill] sm:$0xff] }
 0x20d   : > { %v1487_v10 = vmul.f32 %v3039_v60, %v1455_v20  ;;  %v1515_v54 = vmul.f32 0.04, %v839_v9  ;;  %v1538_v32 = vmul.f32 2.0, %v1514_v34  ;;  %v1489_v1 = vmul.f32 %v3080_v30, %v3287_v26  ;;  %v3524_v9 = vld [vmem:[#allocation13_spill] sm:$0xff] }
 0x20e   : > { %v1552_v41 = vadd.f32 1e-06, %v1540_v7  ;;  %v761_v11 = vadd.f32 %v736_v4, %v717_v12  ;;  %v1502_v59 = vadd.f32 %v1485_v5, %v3048_v44  ;;  %v759_v52 = vadd.f32 %v735_v46, %v715_v39 }
 0x20f   : > { %v1503_v56 = vadd.f32 %v1487_v10, %v3052_v17  ;;  %v1539_v40 = vmul.f32 2.0, %v1515_v54  ;;  %v1550_v63 = vadd.f32 1e-06, %v1538_v32  ;;  %v1504_v53 = vadd.f32 %v1489_v1, %v3043_v57  ;;  %v3529_v10 = vld [vmem:[#allocation21_spill] sm:$0xff] }
 0x210   : > { %v798_v42 = vadd.f32 %v773_v62, %v761_v11  ;;  %v1585_v51 = vmul.f32 %v3182_v48, %v1552_v41  ;;  %v774_v60 = vsel %vm762_vm6, %v772_v13, %v773_v62  ;;  %v796_v14 = vadd.f32 %v772_v13, %v759_v52 }
 0x211   : > { %v1551_v24 = vadd.f32 1e-06, %v1539_v40  ;;  %v1581_v30 = vmul.f32 %v3123_v21, %v1550_v63  ;;  %v797_v26 = vadd.f32 %v774_v60, %v760_v6  ;;  %v817_v2 = vsel %vm799_vm5, %v815_v49, %v816_v22 }
 0x212   : > { %v843_v44 = vadd.f32 %v818_v47, %v798_v42  ;;  %v1600_v39 = vadd.f32 %v1585_v51, %v1504_v53  ;;  %v841_v43 = vadd.f32 %v817_v2, %v796_v14  ;;  %v1445_v17 = vmul.f32 2.0, %v3315_v38 }
 0x213   : > { %v1583_v45 = vmul.f32 %v3179_v55, %v1551_v24  ;;  %v1598_v57 = vadd.f32 %v1581_v30, %v1502_v59  ;;  %v842_v46 = vadd.f32 %v819_v29, %v797_v26  ;;  %v1446_v48 = vmul.f32 2.0, %v3336_v50 }
 0x214   : > { %v1519_v3 = vmul.f32 0.04, %v843_v44  ;;  %v1361_v13 = vadd.f32 1e-06, %v3087_v8  ;;  %v1457_v62 = vadd.f32 1e-06, %v1445_v17  ;;  %v1495_v38 = vmul.f32 %v3167_v61, %v3349_v36 }
 0x215   : > { %v1599_v18 = vadd.f32 %v1583_v45, %v1503_v56  ;;  %v1629_v21 = vrot.slane %v1600_v39, 2  ;;  %v1458_v19 = vadd.f32 1e-06, %v1446_v48  ;;  %v1517_v25 = vmul.f32 0.04, %v841_v43  ;;  %v3528_v61 = vld [vmem:[#allocation18_spill] sm:$0xff] }
 0x216   : > { %v1543_v49 = vmul.f32 2.0, %v1519_v3  ;;  %v1362_v22 = vadd.f32 1e-06, %v3090_v15  ;;  %v1518_v28 = vmul.f32 0.04, %v842_v46  ;;  %v1626_v55 = vrot.slane %v1598_v57, 2 }
 0x217   : > { %v1627_v27 = vrot.slane %v1599_v18, 2  ;;  %v1491_v4 = vmul.f32 %v3523_v35, %v1457_v62  ;;  %v1541_v50 = vmul.f32 2.0, %v1517_v25  ;;  %v1493_v8 = vmul.f32 %v3524_v9, %v1458_v19 }
 0x218   : > { %v1555_v47 = vadd.f32 1e-06, %v1543_v49  ;;  %v1542_v23 = vmul.f32 2.0, %v1518_v28  ;;  %v1399_v20 = vmul.f32 %v3526_v16, %v3525_v58  ;;  %v1395_v29 = vmul.f32 %v3527_v33, %v1361_v13 }
 0x219   : > { %v1628_v0 = vsel %vm799_vm5, %v1626_v55, %v1627_v27  ;;  %v1630_v15 = vsel %vm799_vm5, %v1627_v27, %v1629_v21  ;;  %v1553_v34 = vadd.f32 1e-06, %v1541_v50  ;;  %v1397_v36 = vmul.f32 %v3528_v61, %v1362_v22 }
 0x21a   : > { %1644 = vrot.lane.b32.xlu0 %v1628_v0, %s2082_s14  ;;  %1646 = vrot.lane.b32.xlu1 %v1630_v15, %s2082_s14  ;;  %v1554_v7 = vadd.f32 1e-06, %v1542_v23  ;;  %v1507_v12 = vadd.f32 %v1495_v38, %v1399_v20  ;;  %v1591_v6 = vmul.f32 %v3290_v37, %v1555_v47  ;;  %v1505_v5 = vadd.f32 %v1491_v4, %v1395_v29 }
 0x21b   : > { %v1587_v54 = vmul.f32 %v3529_v10, %v1553_v34  ;;  %v1506_v32 = vadd.f32 %v1493_v8, %v1397_v36 }
 0x21c   : > { %v1589_v1 = vmul.f32 %v3281_v31, %v1554_v7  ;;  %v1603_v41 = vadd.f32 %v1591_v6, %v1507_v12 }
 0x21d   : > { %v1601_v11 = vadd.f32 %v1587_v54, %v1505_v5 }
 0x21e   : > { %v1602_v59 = vadd.f32 %v1589_v1, %v1506_v32  ;;  %v1634_v52 = vrot.slane %v1603_v41, 2 }
 0x21f   : > { %v1631_v56 = vrot.slane %v1601_v11, 2 }
 0x220   : > { %v1632_v40 = vrot.slane %v1602_v59, 2 }
 0x222   : > { %v1633_v63 = vsel %vm799_vm5, %v1631_v56, %v1632_v40  ;;  %v1635_v53 = vsel %vm799_vm5, %v1632_v40, %v1634_v52 }
 0x223   : > { %1648 = vrot.lane.b32.xlu0 %v1633_v63, %s2082_s14  ;;  %1650 = vrot.lane.b32.xlu1 %v1635_v53, %s2082_s14 }
 0x265   : > { %v1637_v37 = vpop.permute.xlu0 %1636  ;;  %v1639_v42 = vpop.permute.xlu1 %1638 }
 0x266   : > { %v1662_v31 = vsel %vm1660_vm7, %v1639_v42, 0.0  ;;  %v1661_v60 = vsel %vm1660_vm7, %v1637_v37, 0.0 }
 0x267   : > { %v1663_v24 = vadd.f32 %v1662_v31, %v1661_v60 }
 0x27d   : > { %v1641_v51 = vpop.permute.xlu0 %1640  ;;  %v1643_v30 = vpop.permute.xlu1 %1642 }
 0x27e   : > { %v1664_v14 = vsel %vm1660_vm7, %v1641_v51, 0.0  ;;  %v1666_v2 = vsel %vm1660_vm7, %v1643_v30, 0.0 }
 0x27f   : > { %v1665_v26 = vadd.f32 %v1664_v14, %v1663_v24 }
 0x281   : > { %v1667_v43 = vadd.f32 %v1666_v2, %v1665_v26 }
 0x28c   : > { %v1645_v44 = vpop.permute.xlu0 %1644  ;;  %v1647_v17 = vpop.permute.xlu1 %1646 }
 0x28d   : > { %v1668_v39 = vsel %vm1660_vm7, %v1645_v44, 0.0  ;;  %v1670_v57 = vsel %vm1660_vm7, %v1647_v17, 0.0 }
 0x28e   : > { %v1669_v45 = vadd.f32 %v1668_v39, %v1667_v43 }
 0x290   : > { %v1671_v46 = vadd.f32 %v1670_v57, %v1669_v45 }
 0x295   : > { %v1649_v48 = vpop.permute.xlu0 %1648  ;;  %v1651_v3 = vpop.permute.xlu1 %1650 }
 0x296   : > { %v1672_v13 = vsel %vm1660_vm7, %v1649_v48, 0.0  ;;  %v1674_v62 = vsel %vm1660_vm7, %v1651_v3, 0.0 }
 0x297   : > { %v1673_v18 = vadd.f32 %v1672_v13, %v1671_v46 }
 0x299   : > { %v1675_v21 = vadd.f32 %v1674_v62, %v1673_v18 }
 0x29b   : > { %1676 = vadd.xlane.f32.xlu0 %v1675_v21 }
 0x324   : > { %v1677_v19 = vpop.xlane.xlu0 %1676 }
 0x325   : > { %v1678_v25 = vrot.slane %v1677_v19, 4 }
 0x327   : > { %v1679_v49 = vadd.f32 %v1678_v25, %v1677_v19 }
 0x329   : > { %v1680_v22 = vrot.slane %v1679_v49, 2 }
 0x32b   : > { %v1681_v28 = vadd.f32 %v1680_v22, %v1679_v49 }
 0x32d   : > { %v1682_v38 = vrot.slane %v1681_v28, 1 }
 0x32f   : > { %v1683_v55 = vadd.f32 %v1682_v38, %v1681_v28 }
 0x331   : > { %1810 = vpush %v1683_v55 }
 0x362   : > { %s1811_s26 = spop %1810 }
 0x363   : > { %v1685_v27 = vstv %s1811_s26 }
 0x364   : > { %1686 = vst [vmem:[%s202_s17] sm:$0x1] %v1685_v27 }
 0x365   : > { %2017 = shalt.err (!%p2014_p4)
}
 0x366   : > { %s2018_s19 = scalar_lea.hbm %s1698_s25, 16  ;;  %s2022_s29 = scalar_lea.hbm %s3462_s2, 32 }
 0x367   : > { %p2019_p9 = scmp.ne.s32.totalorder %s1698_s25, %s2018_s19  ;;  %p2023_p5 = scmp.lt.s32.totalorder %s1698_s25, %s3462_s2 }
 0x368   : > { %p2024_p8 = scmp.lt.s32.totalorder %s2022_s29, %s2018_s19 }
 0x369   : > { %p2020_p11 = pnand %p2019_p9, %p3530_p1 }
 0x36a   : > { %p2025_p6 = por %p2024_p8, %p2023_p5 }
 0x36b   : > { %p2021_p3 = pneg %p2020_p11 }
 0x36d   : > { %p2026_p13 = pnand %p2025_p6, %p2021_p3 }
 0x36f   : > { %2029 = shalt.err (!%p2026_p13)
}
 0x370   : > { %1816 = dma.vmem_to_hbm [thread:$0]  (%p3530_p1), %s3420_s28, 16, %s1698_s25, %s1688_s7  }
 0x371 PF: > { %s1712_s6 = sand.u32 1, %s2060_s9   ;;  %p3531_p12 = scmp.ne.s32.totalorder %s3485_s22, 0 }
 0x372   : > { %p3532_p7 = scmp.ge.s32.totalorder %s2072_s12, 2  ;;  %s1713_s14 = scalar_lea.sflag [#allocation6], %s1712_s6 }
 0x374   : > { %p1826_p10 = pnand %p3532_p7, %p3531_p12 }
 0x376   : > { %p1827_p0 = pneg %p1826_p10 }
 0x378   : > { %2055 = dma.done.wait (%p1827_p0), %s1713_s14, 16  }
 0x379   : > { %2057 = vsyncadd (%p1827_p0), %s1713_s14, 4294967280  ;;  %p18_p2 = scmp.ge.s32.totalorder %s2124_s15, 4   ;;  %s3533_s9 = smov %s2064_s10 }
 0x37a   : > { %s3534_s10 = smov %s2068_s11  ;;  %s3535_s11 = smov %s2136_s18 }
 0x37b   : > { %s3536_s12 = smov %s2124_s15  ;;  %20 = sbr.rel (!%p18_p2) target bundleno = 7 (0x7), region = 86 }
 0x380   :  { %1717 = vsyncpa [#allocation5], 1 }
 0x381   :  { %1719 = vsyncpa [#allocation5 + $0x1], 1 }
 0x382   :  { %1720 = vsyncpa [#allocation8], 1 }
 0x383   :  { %1722 = vsyncpa [#allocation8 + $0x1], 1 }
 0x384   :  { %1723 = vsyncpa [#allocation6], 1 }
 0x385   :  { %1725 = vsyncpa [#allocation6 + $0x1], 1 }

</bundles_post_ra>
